<compile_context>
chip_gen: v5e
topology: v5e:2x2
jax: 0.10.0
libtpu: 0.0.40
codegen_flags: <defaults>
</compile_context>

<pallas_src>
import jax
import jax.numpy as jnp
from jax.experimental import pallas as pl
from jax.experimental.pallas import tpu as pltpu


_LANE = 128          # last block dim: multiple of the 128-lane width
_SUBLANE_BF16 = 16   # bf16 packs 16 rows per vreg -> chunk-row granularity


def _round_up(n, m):
    return ((n + m - 1) // m) * m


def _pad_axis(a, axis, target):
    pad = target - a.shape[axis]
    if pad == 0:
        return a
    widths = [(0, 0)] * a.ndim
    widths[axis] = (0, pad)
    return jnp.pad(a, widths)


def _physical_vmem_bytes():
    """Per-core physical VMEM (64 MiB v7x, 128 MiB v5e/v6e); safe fallback."""
    try:
        return int(pltpu.get_tpu_info().vmem_capacity_bytes)
    except Exception:
        return 64 * 1024 * 1024  # conservative (v7x) floor


def _pipeline_chunk_kernel(x_ref, w1_ref, b1_ref, w2_ref, b2_ref, o_ref):
    """One pipeline 'tick': run the full op sequence on one batch chunk."""
    # Cast the activation chunk to the MXU dtype in-kernel (VPU work hidden
    # under MXU slack) -- the input DMA stays in the original dtype, but no
    # extra wrapper-side HBM pass is paid for the cast.
    x = x_ref[...].astype(w1_ref.dtype)
    # stage 1: Linear + ReLU (f32 accumulation, f32 bias/ReLU -- v5e-safe).
    h = jnp.dot(x, w1_ref[...], preferred_element_type=jnp.float32)
    h = jnp.maximum(h + b1_ref[...], 0.0)
    # stage 2: Linear.  Cast the f32 intermediate to the MXU dtype only at the
    # matmul input; keep the f32 accumulator for the bias add.
    y = jnp.dot(h.astype(w2_ref.dtype), w2_ref[...],
                preferred_element_type=jnp.float32)
    o_ref[...] = (y + b2_ref[...]).astype(o_ref.dtype)


def pipeline_execution_streamer(x, w1, b1, w2, b2, *, split_size,
                                mxu_dtype=jnp.bfloat16):
    """Equivalent of PipelineExecutionStreamer.forward for the 2-stage MLP.

    Note: mxu_dtype=bfloat16 deliberately trades ~0.5% rel error for MXU
    throughput; pass mxu_dtype=jnp.float32 for closer parity with the f32
    PyTorch pipeline.
    """
    B, D_in = x.shape
    H = w1.shape[1]
    D_out = w2.shape[1]
    out_dtype = x.dtype
    b1 = b1.reshape(1, -1).astype(jnp.float32)
    b2 = b2.reshape(1, -1).astype(jnp.float32)

    # Chunk rows: bf16 sublane granularity (16), per the perf review.
    split_size = max(_SUBLANE_BF16, _round_up(split_size, _SUBLANE_BF16))

    # Lane-dense padded feature sizes (no-ops when already 128-aligned).
    Dp_in = _round_up(D_in, _LANE)
    Hp = _round_up(H, _LANE)
    Dp_out = _round_up(D_out, _LANE)

    x_bytes = jnp.dtype(x.dtype).itemsize
    out_bytes = jnp.dtype(out_dtype).itemsize
    mxu_bytes = jnp.dtype(mxu_dtype).itemsize

    # VMEM budget derived from the physical per-core capacity (not the 32 MiB
    # scoped default), with ~20% headroom for Mosaic scratch / layout padding.
    vmem_limit = min(int(_physical_vmem_bytes() * 0.75), 100 * 1024 * 1024)
    budget = int(vmem_limit * 0.8)

    def vmem_need(ss):
        return (2 * ss * Dp_in * x_bytes          # x chunk, double-buffered
                + 2 * ss * Dp_out * out_bytes     # out chunk, double-buffered
                + ss * Dp_in * mxu_bytes          # in-kernel bf16 copy of x
                + ss * Hp * 4                     # f32 intermediate h
                + (Dp_in * Hp + Hp * Dp_out) * mxu_bytes   # resident weights
                + 8 * (Hp + Dp_out) * 4)          # resident biases (sublane-padded)

    # Gate the resident-weight strategy / chunk size against the VMEM budget.
    while vmem_need(split_size) > budget and split_size > _SUBLANE_BF16:
        split_size = max(_SUBLANE_BF16, split_size // 2)
    assert vmem_need(split_size) <= budget, (
        "resident weights + minimal activation buffers exceed the per-core "
        "VMEM budget; see TODO(synk) about tiled weight BlockSpecs")

    # Batch handling: no pad copy when split_size divides B (preferred);
    # otherwise zero-pad and slice the garbage rows off below.
    Bp = _round_up(B, split_size)
    n_chunks = Bp // split_size

    xp = _pad_axis(_pad_axis(x, 1, Dp_in), 0, Bp)          # original dtype!
    w1p = _pad_axis(_pad_axis(w1, 0, Dp_in), 1, Hp).astype(mxu_dtype)
    w2p = _pad_axis(_pad_axis(w2, 0, Hp), 1, Dp_out).astype(mxu_dtype)
    b1p = _pad_axis(b1, 1, Hp)
    b2p = _pad_axis(b2, 1, Dp_out)

    cost = pl.CostEstimate(
        flops=2 * Bp * (Dp_in * Hp + Hp * Dp_out),
        transcendentals=0,
        bytes_accessed=(Bp * Dp_in * x_bytes
                        + Bp * Dp_out * out_bytes
                        + (Dp_in * Hp + Hp * Dp_out) * mxu_bytes
                        + (Hp + Dp_out) * 4),
    )

    # Weights / biases: whole array resident in VMEM (single buffer), no
    # per-grid-step re-DMA and no double-buffer replication.
    resident = pl.BlockSpec(memory_space=pltpu.MemorySpace.VMEM)

    out = pl.pallas_call(
        _pipeline_chunk_kernel,
        out_shape=jax.ShapeDtypeStruct((Bp, Dp_out), out_dtype),
        grid=(n_chunks,),
        in_specs=[
            # one batch chunk per grid step (software-pipelined DMA); original
            # dtype, cast to the MXU dtype inside the kernel.
            pl.BlockSpec((split_size, Dp_in), lambda i: (i, 0)),
            resident,   # w1
            resident,   # b1
            resident,   # w2
            resident,   # b2
        ],
        out_specs=pl.BlockSpec((split_size, Dp_out), lambda i: (i, 0)),
        compiler_params=pltpu.CompilerParams(
            dimension_semantics=("parallel",),
            vmem_limit_bytes=vmem_limit,
        ),
        cost_estimate=cost,
    )(xp, w1p, b1p, w2p, b2p)

    return out[:B, :D_out]


def _reference_chunked(x, w1, b1, w2, b2, *, split_size, mxu_dtype=None):
    """Pure-JAX mirror of the PyTorch pipeline (chunk, apply sequence, cat)."""
    b1 = b1.reshape(1, -1)
    b2 = b2.reshape(1, -1)
    if mxu_dtype is not None:
        xq, w1q, w2q = (a.astype(mxu_dtype) for a in (x, w1, w2))
    else:
        xq, w1q, w2q = x, w1, w2
    outs = []
    n_chunks = -(-x.shape[0] // split_size)
    for c in range(n_chunks):
        sl = slice(c * split_size, (c + 1) * split_size)
        h = jnp.dot(xq[sl], w1q, preferred_element_type=jnp.float32) + b1
        h = jnp.maximum(h, 0.0)
        y = jnp.dot(h.astype(w1q.dtype), w2q,
                    preferred_element_type=jnp.float32) + b2
        outs.append(y.astype(x.dtype))
    return jnp.concatenate(outs, axis=0)


if __name__ == "__main__":
    key = jax.random.PRNGKey(0)
    k_x, k_w1, k_b1, k_w2, k_b2 = jax.random.split(key, 5)

    # Lane-dense feature dims; 512-row chunks (fatter than before, per the
    # review) while keeping n_chunks = 4: even and >=2 grid steps per v7x
    # TensorCore so each core still overlaps DMA with compute.
    B = 2048
    split_size = 512
    D_in, H, D_out = 128, 256, 128

    x = jax.random.normal(k_x, (B, D_in), dtype=jnp.float32)
    # Deterministic synthetic parameters (no checkpoint loading).
    w1 = jax.random.normal(k_w1, (D_in, H), dtype=jnp.float32) * 0.1
    b1 = jax.random.normal(k_b1, (1, H), dtype=jnp.float32) * 0.1
    w2 = jax.random.normal(k_w2, (H, D_out), dtype=jnp.float32) * 0.1
    b2 = jax.random.normal(k_b2, (1, D_out), dtype=jnp.float32) * 0.1

    out = pipeline_execution_streamer(x, w1, b1, w2, b2,
                                      split_size=split_size)
    out = jax.block_until_ready(out)
    assert out.shape == (B, D_out)

    # Like-for-like reference (bf16 MXU inputs, f32 accumulation): tight.
    ref_bf16 = _reference_chunked(x, w1, b1, w2, b2, split_size=split_size,
                                  mxu_dtype=jnp.bfloat16)
    assert jnp.allclose(out, ref_bf16, atol=2e-3, rtol=2e-3), \
        "mismatch vs bf16-MXU reference"

    # Pure-f32 pipeline reference: loose (bf16 MXU inputs cost ~0.5% rel err).
    ref_f32 = _reference_chunked(x, w1, b1, w2, b2, split_size=split_size)
    assert jnp.allclose(out, ref_f32, atol=0.15, rtol=0.05), \
        "mismatch vs f32 reference"

    print("KERNEL_OK")
</pallas_src>

<mosaic_0001>
module attributes {stable_mosaic.version = 11 : i64} {
  func.func @_pipeline_chunk_kernel(%arg0: i32, %arg1: memref<512x128xf32, #tpu.memory_space<vmem>>, %arg2: memref<128x256xbf16, #tpu.memory_space<vmem>>, %arg3: memref<1x256xf32, #tpu.memory_space<vmem>>, %arg4: memref<256x128xbf16, #tpu.memory_space<vmem>>, %arg5: memref<1x128xf32, #tpu.memory_space<vmem>>, %arg6: memref<512x128xf32, #tpu.memory_space<vmem>>) attributes {dimension_semantics = [#tpu.dimension_semantics<parallel>], iteration_bounds = array<i64: 4>, scalar_prefetch = 0 : i64, scratch_operands = 0 : i64, tpu.core_type = #tpu.core_type<tc>, window_params = [{transform_indices = @transform_0, window_bounds = array<i64: 512, 128>}, {pipeline_mode = #tpu.pipeline_mode<synchronous>, transform_indices = @transform_1, window_bounds = array<i64: 128, 256>}, {pipeline_mode = #tpu.pipeline_mode<synchronous>, transform_indices = @transform_2, window_bounds = array<i64: 1, 256>}, {pipeline_mode = #tpu.pipeline_mode<synchronous>, transform_indices = @transform_3, window_bounds = array<i64: 256, 128>}, {pipeline_mode = #tpu.pipeline_mode<synchronous>, transform_indices = @transform_4, window_bounds = array<i64: 1, 128>}, {transform_indices = @transform_5, window_bounds = array<i64: 512, 128>}]} {
    %c0 = arith.constant 0 : index
    %c0_0 = arith.constant 0 : index
    %0 = vector.load %arg1[%c0, %c0_0] : memref<512x128xf32, #tpu.memory_space<vmem>>, vector<512x128xf32>
    %1 = arith.truncf %0 : vector<512x128xf32> to vector<512x128xbf16>
    %c0_1 = arith.constant 0 : index
    %c0_2 = arith.constant 0 : index
    %2 = vector.load %arg2[%c0_1, %c0_2] : memref<128x256xbf16, #tpu.memory_space<vmem>>, vector<128x256xbf16>
    %cst = arith.constant dense<0.000000e+00> : vector<512x256xf32>
    %3 = tpu.matmul %1, %2, %cst {dimension_numbers = #tpu.dot_dimension_numbers<[1], [0], [0], [1], [0, 0, 1, 1], [], []>} : vector<512x128xbf16>, vector<128x256xbf16>, vector<512x256xf32> -> vector<512x256xf32>
    %c0_3 = arith.constant 0 : index
    %c0_4 = arith.constant 0 : index
    %4 = vector.load %arg3[%c0_3, %c0_4] : memref<1x256xf32, #tpu.memory_space<vmem>>, vector<1x256xf32>
    %5 = vector.broadcast %4 : vector<1x256xf32> to vector<512x256xf32>
    %6 = arith.addf %3, %5 : vector<512x256xf32>
    %cst_5 = arith.constant 0.000000e+00 : f32
    %7 = vector.broadcast %cst_5 : f32 to vector<512x256xf32>
    %8 = arith.maximumf %6, %7 : vector<512x256xf32>
    %9 = arith.truncf %8 : vector<512x256xf32> to vector<512x256xbf16>
    %c0_6 = arith.constant 0 : index
    %c0_7 = arith.constant 0 : index
    %10 = vector.load %arg4[%c0_6, %c0_7] : memref<256x128xbf16, #tpu.memory_space<vmem>>, vector<256x128xbf16>
    %cst_8 = arith.constant dense<0.000000e+00> : vector<512x128xf32>
    %11 = tpu.matmul %9, %10, %cst_8 {dimension_numbers = #tpu.dot_dimension_numbers<[1], [0], [0], [1], [0, 0, 1, 1], [], []>} : vector<512x256xbf16>, vector<256x128xbf16>, vector<512x128xf32> -> vector<512x128xf32>
    %c0_9 = arith.constant 0 : index
    %c0_10 = arith.constant 0 : index
    %12 = vector.load %arg5[%c0_9, %c0_10] : memref<1x128xf32, #tpu.memory_space<vmem>>, vector<1x128xf32>
    %13 = vector.broadcast %12 : vector<1x128xf32> to vector<512x128xf32>
    %14 = arith.addf %11, %13 : vector<512x128xf32>
    %c0_11 = arith.constant 0 : index
    %c0_12 = arith.constant 0 : index
    %15 = vector.load %arg6[%c0_11, %c0_12] : memref<512x128xf32, #tpu.memory_space<vmem>>, vector<512x128xf32>
    tpu.vector_store %arg6[%c0_11, %c0_12], %14 {strides = array<i32>} : memref<512x128xf32, #tpu.memory_space<vmem>>, vector<512x128xf32>,
    return
  }
  func.func @transform_0(%arg0: i32) -> (i32, i32) {
    %c0_i32 = arith.constant 0 : i32
    %c0_i32_0 = arith.constant 0 : i32
    return %arg0, %c0_i32 : i32, i32
  }
  func.func @transform_1(%arg0: i32) -> (i32, i32) {
    %c0_i32 = arith.constant 0 : i32
    %c0_i32_0 = arith.constant 0 : i32
    %c0_i32_1 = arith.constant 0 : i32
    return %c0_i32, %c0_i32_0 : i32, i32
  }
  func.func @transform_2(%arg0: i32) -> (i32, i32) {
    %c0_i32 = arith.constant 0 : i32
    %c0_i32_0 = arith.constant 0 : i32
    %c0_i32_1 = arith.constant 0 : i32
    return %c0_i32, %c0_i32_0 : i32, i32
  }
  func.func @transform_3(%arg0: i32) -> (i32, i32) {
    %c0_i32 = arith.constant 0 : i32
    %c0_i32_0 = arith.constant 0 : i32
    %c0_i32_1 = arith.constant 0 : i32
    return %c0_i32, %c0_i32_0 : i32, i32
  }
  func.func @transform_4(%arg0: i32) -> (i32, i32) {
    %c0_i32 = arith.constant 0 : i32
    %c0_i32_0 = arith.constant 0 : i32
    %c0_i32_1 = arith.constant 0 : i32
    return %c0_i32, %c0_i32_0 : i32, i32
  }
  func.func @transform_5(%arg0: i32) -> (i32, i32) {
    %c0_i32 = arith.constant 0 : i32
    %c0_i32_0 = arith.constant 0 : i32
    return %arg0, %c0_i32 : i32, i32
  }
}

</mosaic_0001>

<bundles_post_ra>
// kernel: tpu_custom_call.1
= control target key start
LH: loop header
LB: loop body
LE: loop exit
PB: predicated region body
PF: predicated region fallthrough
CT: control target
= control target key end

     0   :  { %10 = vsyncpa [#allocation3], 0  ;;  %s2682_s0 = inlined_call_operand.hbm [shape: f32[2048,128], index: 0, kind: input, shape index: {}]   ;;  %s2683_s1 = inlined_call_operand.hbm [shape: bf16[128,256], index: 1, kind: input, shape index: {}]   ;;  %s2684_s2 = inlined_call_operand.hbm [shape: f32[1,256], index: 2, kind: input, shape index: {}]   ;;  %s2685_s3 = inlined_call_operand.hbm [shape: bf16[256,128], index: 3, kind: input, shape index: {}]   ;;  %s2686_s4 = inlined_call_operand.vmem [shape: f32[1,128], index: 4, kind: input, shape index: {}]   ;;  %s2687_s5 = inlined_call_operand.hbm [shape: f32[2048,128], index: 5, kind: output, shape index: {}]  }
   0x1   :  { %12 = vsyncpa [#allocation3 + $0x1], 0 }
   0x2   :  { %13 = vsyncpa [#allocation6], 0 }
   0x3   :  { %14 = vsyncpa [#allocation9], 0 }
   0x4   :  { %15 = vsyncpa [#allocation4], 0 }
   0x5   :  { %17 = vsyncpa [#allocation4 + $0x1], 0  ;;  %s2177_s18 = smov 0   ;;  %s2179_s19 = smov 0  }
   0x6   :  { %s2181_s20 = smov 0   ;;  %s2183_s21 = smov 0  }
   0x7 LB: > { %s2198_s22 = sadd.s32 4294967295, %s2136_s21   ;;  %s1675_s23 = sadd.s32 4294967294, %s2136_s21   ;;  %s2136_s21 = sphi %s2183_s21, %s2699_s21   ;;  %s2132_s20 = sphi %s2181_s20, %s2698_s20   ;;  %s2128_s19 = sphi %s2179_s19, %s2697_s19   ;;  %s2124_s18 = sphi %s2177_s18, %s2696_s18  }
   0x8   : > { %p43_p0 = scmp.ne.s32.totalorder %s2128_s19, %s2124_s18  ;;  %p44_p1 = scmp.eq.s32.totalorder %s2198_s22, 0 }
   0x9   : > { %p151_p2 = scmp.eq.s32.totalorder %s2198_s22, 3  ;;  %p157_p3 = scmp.eq.s32.totalorder %s1675_s23, 3 }
   0xa   : > { %p2207_p4 = por %p44_p1, %p43_p0  ;;  %p1676_p5 = scmp.ge.s32.totalorder %s2136_s21, 1 }
   0xb   : > { %p2212_p6 = por %p157_p3, %p43_p0  ;;  %p164_p7 = scmp.lt.s32.totalorder %s2136_s21, 5 }
   0xc   : > { %s175_s28 = sshll.u32 %s2683_s1, 4  ;;  %s2138_s30 = smov [#allocation5]   ;;  %s176_s28 = int_to_ptr.hbm [resolvable:$true] %s175_s28 }
   0xd   : > { %p2220_p8 = pnand %p1676_p5, %p164_p7  ;;  %s177_s6 = sshll.u32 %s2138_s30, 4  ;;  %s178_s6 = int_to_ptr.vmem [resolvable:$true] %s177_s6 }
   0xe   : > { %s190_s10 = sshll.u32 %s2684_s2, 4  ;;  %s2688_s11 = smov 128   ;;  %s191_s10 = int_to_ptr.hbm [resolvable:$true] %s190_s10 }
   0xf   : > { %p1873_p9 = pneg %p2220_p8  ;;  %s2140_s12 = smov 8  }
  0x10   : > { %s2141_s13 = smov [#allocation7]   ;;  %s201_s17 = sshll.u32 %s2685_s3, 4  ;;  %s202_s17 = int_to_ptr.hbm [resolvable:$true] %s201_s17 }
  0x11   : > { %p2228_p10 = pnand %p1873_p9, %p44_p1  ;;  %s192_s14 = sshll.u32 %s2141_s13, 4  ;;  %s193_s14 = int_to_ptr.vmem [resolvable:$true] %s192_s14 }
  0x12   : > { %s2142_s23 = smov [#allocation8]   ;;  %s2143_s27 = smov 64  }
  0x13   : > { %1876 = dma.hbm_to_vmem [thread:$0]  (!%p2228_p10), %s176_s28, 2048, %s178_s6, [#allocation6], %s2688_s11, %s2688_s11, %s2140_s12  }
  0x14   : > { %1879 = dma.hbm_to_vmem [thread:$0]  (!%p2228_p10), %s191_s10, 32, %s193_s14, [#allocation6]  }
  0x15   : > { %s203_s26 = sshll.u32 %s2142_s23, 4  ;;  %s2144_s28 = smov 4   ;;  %s204_s26 = int_to_ptr.vmem [resolvable:$true] %s203_s26 }
  0x16   : > { %1882 = dma.hbm_to_vmem [thread:$0]  (!%p2228_p10), %s202_s17, 2048, %s204_s26, [#allocation9], %s2143_s27, %s2143_s27, %s2144_s28  }
  0x17   : > { %s2248_s30 = sadd.s32 1, %s2136_s21   ;;  %s30_s8 = sadd.s32 1, %s2132_s20 }
  0x18   : > { %s27_s6 = ssub.s32 %s2136_s21, %s2248_s30  ;;  %p37_p12 = scmp.ne.s32.totalorder %s2132_s20, %s2128_s19 }
  0x19   : > { %p28_p11 = scmp.eq.s32.totalorder %s27_s6, 0  ;;  %p38_p13 = scmp.eq.s32.totalorder %s2136_s21, 0 }
  0x1a   : > { %p2261_p0 = por %p151_p2, %p37_p12  ;;  %p1894_p3 = scmp.lt.s32.totalorder %s2136_s21, 4 }
  0x1b   : > { %s2257_s9 = scalar_select %p28_p11, %s2132_s20, %s30_s8  }
  0x1c   : > { %s220_s13 = sand.u32 1, %s2132_s20   ;;  %s1823_s14 = sshll.u32 %s2136_s21, 9 }
  0x1d   : > { %p39_p5 = por %p38_p13, %p37_p12  ;;  %s1681_s7 = sshll.u32 %s220_s13, 9 }
  0x1e   : > { %s229_s17 = scalar_lea.hbm %s2682_s0, %s1823_s14  ;;  %s224_s26 = scalar_lea.vmem [#allocation2], %s1681_s7 }
  0x1f   : > { %s230_s23 = sshll.u32 %s229_s17, 4  ;;  %s232_s27 = sshll.u32 %s224_s26, 4  ;;  %s231_s23 = int_to_ptr.hbm [resolvable:$true] %s230_s23  ;;  %s233_s27 = int_to_ptr.vmem [resolvable:$true] %s232_s27 }
  0x20   : > { %p2271_p7 = pnand %p1894_p3, %p39_p5  ;;  %s221_s6 = scalar_lea.sflag [#allocation3], %s220_s13 }
  0x21   : > { %s2032_s8 = sshra.s32 %s231_s23, 4  ;;  %s2039_s7 = scalar_lea.hbm %s2682_s0, 2048  ;;  %s2033_s8 = int_to_ptr.hbm [resolvable:$true] %s2032_s8 }
  0x22   : > { %s2034_s11 = scalar_lea.hbm %s2033_s8, 512  ;;  %p2036_p9 = pneg %p2271_p7 }
  0x23   : > { %p2035_p2 = scmp.ne.s32.totalorder %s2033_s8, %s2034_s11  ;;  %p2040_p12 = scmp.lt.s32.totalorder %s2033_s8, %s2682_s0 }
  0x24   : > { %p2041_p13 = scmp.lt.s32.totalorder %s2039_s7, %s2034_s11 }
  0x25   : > { %p2037_p10 = pnand %p2036_p9, %p2035_p2 }
  0x26   : > { %p2042_p3 = por %p2041_p13, %p2040_p12 }
  0x27   : > { %p2038_p11 = pneg %p2037_p10 }
  0x29   : > { %p2043_p5 = pnand %p2042_p3, %p2038_p11 }
  0x2b   : > { %2046 = shalt.err (!%p2043_p5)
}
  0x2c   : > { %s2695_s13 = smov 128   ;;  %244 = sbr.rel (%p2220_p8) target bundleno = 872 (0x368), region = 40 }
  0x2d   : > { %1886 = dma.hbm_to_vmem [thread:$0]  (!%p2271_p7), %s231_s23, 8192, %s233_s27, %s221_s6, %s2695_s13, %s2695_s13, %s2140_s12  }
  0x2e   : > { %s2291_s26 = sand.u32 (!%p2220_p8), 1, %s2128_s19  }
  0x2f   : > { %s1685_s11 = sshll.u32 (!%p2220_p8), %s2291_s26, 9  ;;  %s247_s8 = scalar_lea.sflag (!%p2220_p8), [#allocation3], %s2291_s26 }
  0x30   : > { %s2297_s14 = scalar_lea.vmem (!%p2220_p8), [#allocation2], %s1685_s11 }
  0x31   : > { %2107 = dma.done.wait (%p2207_p4), %s247_s8, 8192  }
  0x32   : > { %2109 = vsyncadd (%p2207_p4), %s247_s8, 4294959104 }
  0x33   : > { %2111 = dma.done.wait (%p44_p1), [#allocation6], 2080  }
  0x34   : > { %2113 = vsyncadd (%p44_p1), [#allocation6], 4294965216 }
  0x35   : > { %2115 = dma.done.wait (%p44_p1), [#allocation9], 2048  }
  0x36   : > { %2117 = vsyncadd (%p44_p1), [#allocation9], 4294965248  ;;  %v1748_v0 = vld [vmem:[#allocation5 + $0x70] sm:$0xf]  ;;  %v1839_v1 = vld [vmem:[#allocation5 + $0x74] sm:$0xf0] }
  0x37   : > { %v1838_v2 = vld [vmem:[#allocation5 + $0x74] sm:$0xf]  ;;  %v1749_v3 = vor.u32 %v1839_v1, %v1748_v0  ;;  %v1750_v4 = vld [vmem:[#allocation5 + $0x78] sm:$0xf0]  ;;  %v1740_v5 = vld [vmem:[#allocation5 + $0x60] sm:$0xf] }
  0x38   : > { %v1837_v6 = vld [vmem:[#allocation5 + $0x64] sm:$0xf0]  ;;  %v1753_v7 = vor.u32 %v1838_v2, %v1750_v4  ;;  %v1836_v8 = vld [vmem:[#allocation5 + $0x64] sm:$0xf]  ;;  %v1742_v9 = vld [vmem:[#allocation5 + $0x68] sm:$0xf0] }
  0x39   : > { %493 = vmatpush.bf16.msra.mxu0 %v1749_v3  ;;  %v1741_v10 = vor.u32 %v1837_v6, %v1740_v5  ;;  %v1745_v11 = vor.u32 %v1836_v8, %v1742_v9  ;;  %v1732_v12 = vld [vmem:[#allocation5 + $0x50] sm:$0xf]  ;;  %v1835_v13 = vld [vmem:[#allocation5 + $0x54] sm:$0xf0]  ;;  %v1834_v14 = vld [vmem:[#allocation5 + $0x54] sm:$0xf] }
  0x3a   : > { %662 = vmatpush.bf16.msra.mxu1 %v1753_v7  ;;  %v1734_v15 = vld [vmem:[#allocation5 + $0x58] sm:$0xf0]  ;;  %v1733_v16 = vor.u32 %v1835_v13, %v1732_v12  ;;  %v1724_v18 = vld [vmem:[#allocation5 + $0x40] sm:$0xf]  ;;  %v1833_v19 = vld [vmem:[#allocation5 + $0x44] sm:$0xf0] }
  0x3b   : > { %v1737_v17 = vor.u32 %v1834_v14, %v1734_v15  ;;  %v1832_v20 = vld [vmem:[#allocation5 + $0x44] sm:$0xf]  ;;  %v1726_v21 = vld [vmem:[#allocation5 + $0x48] sm:$0xf0]  ;;  %v1725_v22 = vor.u32 %v1833_v19, %v1724_v18  ;;  %v1716_v24 = vld [vmem:[#allocation5 + $0x30] sm:$0xf] }
  0x3c   : > { %v1729_v23 = vor.u32 %v1832_v20, %v1726_v21  ;;  %v1831_v25 = vld [vmem:[#allocation5 + $0x34] sm:$0xf0]  ;;  %v1830_v26 = vld [vmem:[#allocation5 + $0x34] sm:$0xf]  ;;  %v1718_v27 = vld [vmem:[#allocation5 + $0x38] sm:$0xf0] }
  0x3d   : > { %494 = vmatpush.bf16.msra.mxu0 %v1741_v10  ;;  %v1717_v28 = vor.u32 %v1831_v25, %v1716_v24  ;;  %v1721_v29 = vor.u32 %v1830_v26, %v1718_v27  ;;  %v1708_v30 = vld [vmem:[#allocation5 + $0x20] sm:$0xf]  ;;  %v1829_v31 = vld [vmem:[#allocation5 + $0x24] sm:$0xf0]  ;;  %v1828_v32 = vld [vmem:[#allocation5 + $0x24] sm:$0xf] }
  0x3e   : > { %663 = vmatpush.bf16.msra.mxu1 %v1745_v11  ;;  %v1710_v33 = vld [vmem:[#allocation5 + $0x28] sm:$0xf0]  ;;  %v1709_v34 = vor.u32 %v1829_v31, %v1708_v30  ;;  %v1700_v36 = vld [vmem:[#allocation5 + $0x10] sm:$0xf]  ;;  %v1827_v37 = vld [vmem:[#allocation5 + $0x14] sm:$0xf0] }
  0x3f   : > { %v1713_v35 = vor.u32 %v1828_v32, %v1710_v33  ;;  %v1826_v38 = vld [vmem:[#allocation5 + $0x14] sm:$0xf]  ;;  %v1702_v39 = vld [vmem:[#allocation5 + $0x18] sm:$0xf0]  ;;  %v1701_v40 = vor.u32 %v1827_v37, %v1700_v36  ;;  %v1692_v42 = vld [vmem:[#allocation5] sm:$0xf] }
  0x40   : > { %v1705_v41 = vor.u32 %v1826_v38, %v1702_v39  ;;  %v1825_v43 = vld [vmem:[#allocation5 + $0x4] sm:$0xf0]  ;;  %v1824_v44 = vld [vmem:[#allocation5 + $0x4] sm:$0xf]  ;;  %v1694_v45 = vld [vmem:[#allocation5 + $0x8] sm:$0xf0] }
  0x41   : > { %495 = vmatpush.bf16.msra.mxu0 %v1733_v16  ;;  %v1693_v46 = vor.u32 %v1825_v43, %v1692_v42  ;;  %v295_v47 = vld [vmem:[%s2297_s14] sm:$0xff]  ;;  %v296_v48 = vld [vmem:[%s2297_s14 + $0x8] sm:$0xff]  ;;  %v1697_v49 = vor.u32 %v1824_v44, %v1694_v45  ;;  %v297_v51 = vld [vmem:[%s2297_s14 + $0x10] sm:$0xff]  ;;  %s2396_s12 = scalar_lea.vmem [#allocation10], %s1685_s11  ;;  %s1856_s28 = sshll.u32 %s2198_s22, 9 }
  0x42   : > { %664 = vmatpush.bf16.msra.mxu1 %v1737_v17  ;;  %v359_v50 = vpack.c.bf16 %v296_v48, %v295_v47  ;;  %v298_v52 = vld [vmem:[%s2297_s14 + $0x18] sm:$0xff]  ;;  %v299_v54 = vld [vmem:[%s2297_s14 + $0x20] sm:$0xff]  ;;  %v300_v55 = vld [vmem:[%s2297_s14 + $0x28] sm:$0xff]  ;;  %s1569_s7 = scalar_lea.hbm %s2687_s5, %s1856_s28  ;;  %s1570_s16 = sshll.u32 %s2396_s12, 4  ;;  %s1571_s16 = int_to_ptr.vmem [resolvable:$true] %s1570_s16 }
  0x43   : > { %v360_v53 = vpack.c.bf16 %v298_v52, %v297_v51  ;;  %v361_v56 = vpack.c.bf16 %v300_v55, %v299_v54  ;;  %v301_v57 = vld [vmem:[%s2297_s14 + $0x30] sm:$0xff]  ;;  %v302_v58 = vld [vmem:[%s2297_s14 + $0x38] sm:$0xff]  ;;  %v303_v60 = vld [vmem:[%s2297_s14 + $0x40] sm:$0xff]  ;;  %s1572_s17 = sshll.u32 %s1569_s7, 4  ;;  %s1558_s13 = scalar_lea.sflag [#allocation4], %s2291_s26  ;;  %s1573_s17 = int_to_ptr.hbm [resolvable:$true] %s1572_s17 }
  0x44   : > { %v362_v59 = vpack.c.bf16 %v302_v58, %v301_v57  ;;  %v304_v61 = vld [vmem:[%s2297_s14 + $0x48] sm:$0xff]  ;;  %v1847_v63 = vld [vmem:[#allocation8 + $0x38] sm:$0xff]  ;;  %v305_v1 = vld [vmem:[%s2297_s14 + $0x50] sm:$0xff]  ;;  %s2076_s11 = sshra.s32 %s1573_s17, 4  ;;  %s2082_s24 = scalar_lea.hbm %s2687_s5, 2048  ;;  %s2077_s11 = int_to_ptr.hbm [resolvable:$true] %s2076_s11 }
  0x45   : > { %496 = vmatpush.bf16.msra.mxu0 %v1725_v22  ;;  %v363_v62 = vpack.c.bf16 %v304_v61, %v303_v60  ;;  %v1855_v0 = vld [vmem:[#allocation8 + $0x78] sm:$0xff]  ;;  %1155 = vmatpush.bf16.msra.mxu2 %v1847_v63  ;;  %v1846_v4 = vld [vmem:[#allocation8 + $0x30] sm:$0xff]  ;;  %v1845_v6 = vld [vmem:[#allocation8 + $0x28] sm:$0xff]  ;;  %s2078_s22 = scalar_lea.hbm %s2077_s11, 512  ;;  %p2083_p7 = scmp.lt.s32.totalorder %s2077_s11, %s2687_s5 }
  0x46   : > { %665 = vmatpush.bf16.msra.mxu1 %v1729_v23  ;;  %1324 = vmatpush.bf16.msra.mxu3 %v1855_v0  ;;  %v306_v2 = vld [vmem:[%s2297_s14 + $0x58] sm:$0xff]  ;;  %v1853_v7 = vld [vmem:[#allocation8 + $0x68] sm:$0xff]  ;;  %v1844_v8 = vld [vmem:[#allocation8 + $0x20] sm:$0xff]  ;;  %p2079_p1 = scmp.ne.s32.totalorder %s2077_s11, %s2078_s22  ;;  %p2084_p2 = scmp.lt.s32.totalorder %s2082_s24, %s2078_s22 }
  0x47   : > { %v364_v3 = vpack.c.bf16 %v306_v2, %v305_v1  ;;  %v1854_v5 = vld [vmem:[#allocation8 + $0x70] sm:$0xff]  ;;  %v1852_v9 = vld [vmem:[#allocation8 + $0x60] sm:$0xff]  ;;  %v1843_v13 = vld [vmem:[#allocation8 + $0x18] sm:$0xff] }
  0x48   : > { %v307_v10 = vld [vmem:[%s2297_s14 + $0x60] sm:$0xff]  ;;  %v308_v11 = vld [vmem:[%s2297_s14 + $0x68] sm:$0xff]  ;;  %v1842_v15 = vld [vmem:[#allocation8 + $0x10] sm:$0xff]  ;;  %p2080_p4 = pnand %p2079_p1, %p2261_p0  ;;  %p2085_p9 = por %p2084_p2, %p2083_p7 }
  0x49   : > { %497 = vmatpush.bf16.msra.mxu0 %v1717_v28  ;;  %1156 = vmatpush.bf16.msra.mxu2 %v1846_v4  ;;  %v365_v12 = vpack.c.bf16 %v308_v11, %v307_v10  ;;  %v1851_v14 = vld [vmem:[#allocation8 + $0x58] sm:$0xff]  ;;  %v1850_v16 = vld [vmem:[#allocation8 + $0x50] sm:$0xff]  ;;  %v1841_v17 = vld [vmem:[#allocation8 + $0x8] sm:$0xff] }
  0x4a   : > { %666 = vmatpush.bf16.msra.mxu1 %v1721_v29  ;;  %1325 = vmatpush.bf16.msra.mxu3 %v1854_v5  ;;  %v1849_v18 = vld [vmem:[#allocation8 + $0x48] sm:$0xff]  ;;  %v1840_v19 = vld [vmem:[#allocation8] sm:$0xff]  ;;  %v310_v22 = vld [vmem:[%s2297_s14 + $0x78] sm:$0xff]  ;;  %p2081_p8 = pneg %p2080_p4 }
  0x4b   : > { %v1848_v20 = vld [vmem:[#allocation8 + $0x40] sm:$0xff]  ;;  %v309_v21 = vld [vmem:[%s2297_s14 + $0x70] sm:$0xff]  ;;  %v407_v27 = vld [vmem:[#allocation7] sm:$0x3] }
  0x4c   : > { %v366_v23 = vpack.c.bf16 %v310_v22, %v309_v21  ;;  %v311_v24 = vld [vmem:[%s2297_s14 + $0x80] sm:$0xff]  ;;  %v312_v25 = vld [vmem:[%s2297_s14 + $0x88] sm:$0xff]  ;;  %v2329_v30 = vperm.slane %v407_v27, 0  ;;  %v2331_v31 = vperm.slane %v407_v27, 1  ;;  %v313_v42 = vld [vmem:[%s2297_s14 + $0x90] sm:$0xff]  ;;  %p2086_p10 = pnand %p2085_p9, %p2081_p8 }
  0x4d   : > { %498 = vmatpush.bf16.msra.mxu0 %v1709_v34  ;;  %1157 = vmatpush.bf16.msra.mxu2 %v1845_v6  ;;  %v367_v26 = vpack.c.bf16 %v312_v25, %v311_v24  ;;  %v314_v43 = vld [vmem:[%s2297_s14 + $0x98] sm:$0xff]  ;;  %v316_v60 = vld [vmem:[%s2297_s14 + $0xa8] sm:$0xff] }
  0x4e   : > { %667 = vmatpush.bf16.msra.mxu1 %v1713_v35  ;;  %1326 = vmatpush.bf16.msra.mxu3 %v1853_v7 }
  0x51   : > { %499 = vmatpush.bf16.msra.mxu0 %v1701_v40  ;;  %1158 = vmatpush.bf16.msra.mxu2 %v1844_v8 }
  0x52   : > { %668 = vmatpush.bf16.msra.mxu1 %v1705_v41  ;;  %1327 = vmatpush.bf16.msra.mxu3 %v1852_v9 }
  0x55   : > { %500 = vmatpush.bf16.msra.mxu0 %v1693_v46  ;;  %1159 = vmatpush.bf16.msra.mxu2 %v1843_v13  ;;  %v368_v46 = vpack.c.bf16 %v314_v43, %v313_v42  ;;  %v318_v13 = vld [vmem:[%s2297_s14 + $0xb8] sm:$0xff] }
  0x56   : > { %669 = vmatpush.bf16.msra.mxu1 %v1697_v49  ;;  %1328 = vmatpush.bf16.msra.mxu3 %v1851_v14 }
  0x58   : > { %501 = vmatmul.bf16.vlgmr.msra.gmra.mxu0 %v359_v50 }
  0x59   : > { %670 = vmatmul.bf16.vlgmr.msra.gmra.mxu1 %v359_v50  ;;  %1160 = vmatpush.bf16.msra.mxu2 %v1842_v15 }
  0x5a   : > { %1329 = vmatpush.bf16.msra.mxu3 %v1850_v16 }
  0x5d   : > { %1161 = vmatpush.bf16.msra.mxu2 %v1841_v17 }
  0x5e   : > { %1330 = vmatpush.bf16.msra.mxu3 %v1849_v18 }
  0x61   : > { %1162 = vmatpush.bf16.msra.mxu2 %v1840_v19 }
  0x62   : > { %1331 = vmatpush.bf16.msra.mxu3 %v1848_v20 }
  0x68   : > { %506 = vmatmul.bf16.gmra.mxu0 %v360_v53 }
  0x69   : > { %675 = vmatmul.bf16.gmra.mxu1 %v360_v53 }
  0x78   : > { %511 = vmatmul.bf16.gmra.mxu0 %v361_v56 }
  0x79   : > { %680 = vmatmul.bf16.gmra.mxu1 %v361_v56 }
  0x88   : > { %516 = vmatmul.bf16.gmra.mxu0 %v362_v59 }
  0x89   : > { %685 = vmatmul.bf16.gmra.mxu1 %v362_v59  ;;  %v315_v59 = vld [vmem:[%s2297_s14 + $0xa0] sm:$0xff] }
  0x8a   : > { %v369_v63 = vpack.c.bf16 %v316_v60, %v315_v59 }
  0x98   : > { %521 = vmatmul.bf16.gmra.mxu0 %v363_v62 }
  0x99   : > { %690 = vmatmul.bf16.gmra.mxu1 %v363_v62 }
  0xa8   : > { %526 = vmatmul.bf16.gmra.mxu0 %v364_v3 }
  0xa9   : > { %695 = vmatmul.bf16.gmra.mxu1 %v364_v3 }
  0xb8   : > { %531 = vmatmul.bf16.gmra.mxu0 %v365_v12 }
  0xb9   : > { %700 = vmatmul.bf16.gmra.mxu1 %v365_v12  ;;  %v317_v12 = vld [vmem:[%s2297_s14 + $0xb0] sm:$0xff] }
  0xba   : > { %v370_v16 = vpack.c.bf16 %v318_v13, %v317_v12 }
  0xc8   : > { %536 = vmatmul.bf16.gmra.mxu0 %v366_v23 }
  0xc9   : > { %705 = vmatmul.bf16.gmra.mxu1 %v366_v23 }
  0xd5   : > { %v502_v28 = vpop.f32.mrf.mxu0 }
  0xd6   : > { %v671_v29 = vpop.f32.mrf.mxu1  ;;  %v503_v32 = vadd.f32 %v502_v28, %v2329_v30 }
  0xd7   : > { %v672_v33 = vadd.f32 %v671_v29, %v2331_v31  ;;  %v319_v29 = vld [vmem:[%s2297_s14 + $0xc0] sm:$0xff] }
  0xd8   : > { %541 = vmatmul.bf16.gmra.mxu0 %v367_v26  ;;  %v831_v38 = vmax.f32 %v503_v32, 0.0  ;;  %v320_v32 = vld [vmem:[%s2297_s14 + $0xc8] sm:$0xff] }
  0xd9   : > { %710 = vmatmul.bf16.gmra.mxu1 %v367_v26  ;;  %v832_v40 = vmax.f32 %v672_v33, 0.0 }
  0xdd   : > { %v504_v34 = vpop.f32.mrf.mxu0 }
  0xde   : > { %v505_v35 = vadd.f32 %v504_v34, %v2329_v30  ;;  %v673_v36 = vpop.f32.mrf.mxu1 }
  0xdf   : > { %v674_v37 = vadd.f32 %v673_v36, %v2331_v31 }
  0xe0   : > { %v833_v39 = vmax.f32 %v505_v35, 0.0  ;;  %v371_v35 = vpack.c.bf16 %v320_v32, %v319_v29 }
  0xe1   : > { %v834_v41 = vmax.f32 %v674_v37, 0.0 }
  0xe2   : > { %v959_v44 = vpack.c.bf16 %v833_v39, %v831_v38 }
  0xe3   : > { %v960_v45 = vpack.c.bf16 %v834_v41, %v832_v40 }
  0xe4   : > { %1163 = vmatmul.bf16.vlgmr.msra.gmra.mxu2 %v959_v44 }
  0xe5   : > { %1332 = vmatmul.bf16.vlgmr.msra.gmra.mxu3 %v960_v45  ;;  %v507_v47 = vpop.f32.mrf.mxu0 }
  0xe6   : > { %v676_v48 = vpop.f32.mrf.mxu1  ;;  %v508_v49 = vadd.f32 %v507_v47, %v2329_v30 }
  0xe7   : > { %v677_v50 = vadd.f32 %v676_v48, %v2331_v31  ;;  %v321_v48 = vld [vmem:[%s2297_s14 + $0xd0] sm:$0xff] }
  0xe8   : > { %546 = vmatmul.bf16.gmra.mxu0 %v368_v46  ;;  %v835_v55 = vmax.f32 %v508_v49, 0.0  ;;  %v322_v49 = vld [vmem:[%s2297_s14 + $0xd8] sm:$0xff] }
  0xe9   : > { %715 = vmatmul.bf16.gmra.mxu1 %v368_v46  ;;  %v836_v57 = vmax.f32 %v677_v50, 0.0 }
  0xed   : > { %v509_v51 = vpop.f32.mrf.mxu0 }
  0xee   : > { %v510_v52 = vadd.f32 %v509_v51, %v2329_v30  ;;  %v678_v53 = vpop.f32.mrf.mxu1 }
  0xef   : > { %v679_v54 = vadd.f32 %v678_v53, %v2331_v31 }
  0xf0   : > { %v837_v56 = vmax.f32 %v510_v52, 0.0  ;;  %v372_v52 = vpack.c.bf16 %v322_v49, %v321_v48 }
  0xf1   : > { %v838_v58 = vmax.f32 %v679_v54, 0.0 }
  0xf2   : > { %v961_v61 = vpack.c.bf16 %v837_v56, %v835_v55 }
  0xf3   : > { %v962_v62 = vpack.c.bf16 %v838_v58, %v836_v57 }
  0xf4   : > { %1168 = vmatmul.bf16.gmra.mxu2 %v961_v61 }
  0xf5   : > { %1337 = vmatmul.bf16.gmra.mxu3 %v962_v62  ;;  %v512_v0 = vpop.f32.mrf.mxu0 }
  0xf6   : > { %v681_v1 = vpop.f32.mrf.mxu1  ;;  %v513_v2 = vadd.f32 %v512_v0, %v2329_v30 }
  0xf7   : > { %v682_v3 = vadd.f32 %v681_v1, %v2331_v31  ;;  %v323_v1 = vld [vmem:[%s2297_s14 + $0xe0] sm:$0xff] }
  0xf8   : > { %551 = vmatmul.bf16.gmra.mxu0 %v369_v63  ;;  %v839_v8 = vmax.f32 %v513_v2, 0.0  ;;  %v324_v2 = vld [vmem:[%s2297_s14 + $0xe8] sm:$0xff] }
  0xf9   : > { %720 = vmatmul.bf16.gmra.mxu1 %v369_v63  ;;  %v840_v10 = vmax.f32 %v682_v3, 0.0 }
  0xfd   : > { %v514_v4 = vpop.f32.mrf.mxu0 }
  0xfe   : > { %v515_v5 = vadd.f32 %v514_v4, %v2329_v30  ;;  %v683_v6 = vpop.f32.mrf.mxu1 }
  0xff   : > { %v684_v7 = vadd.f32 %v683_v6, %v2331_v31 }
 0x100   : > { %v841_v9 = vmax.f32 %v515_v5, 0.0  ;;  %v373_v5 = vpack.c.bf16 %v324_v2, %v323_v1 }
 0x101   : > { %v842_v11 = vmax.f32 %v684_v7, 0.0 }
 0x102   : > { %v963_v14 = vpack.c.bf16 %v841_v9, %v839_v8 }
 0x103   : > { %v964_v15 = vpack.c.bf16 %v842_v11, %v840_v10 }
 0x104   : > { %1173 = vmatmul.bf16.gmra.mxu2 %v963_v14 }
 0x105   : > { %1342 = vmatmul.bf16.gmra.mxu3 %v964_v15  ;;  %v517_v17 = vpop.f32.mrf.mxu0 }
 0x106   : > { %v686_v18 = vpop.f32.mrf.mxu1  ;;  %v518_v19 = vadd.f32 %v517_v17, %v2329_v30 }
 0x107   : > { %v687_v20 = vadd.f32 %v686_v18, %v2331_v31  ;;  %v325_v18 = vld [vmem:[%s2297_s14 + $0xf0] sm:$0xff] }
 0x108   : > { %556 = vmatmul.bf16.gmra.mxu0 %v370_v16  ;;  %v843_v25 = vmax.f32 %v518_v19, 0.0  ;;  %v326_v19 = vld [vmem:[%s2297_s14 + $0xf8] sm:$0xff] }
 0x109   : > { %725 = vmatmul.bf16.gmra.mxu1 %v370_v16  ;;  %v844_v27 = vmax.f32 %v687_v20, 0.0 }
 0x10d   : > { %v519_v21 = vpop.f32.mrf.mxu0 }
 0x10e   : > { %v520_v22 = vadd.f32 %v519_v21, %v2329_v30  ;;  %v688_v23 = vpop.f32.mrf.mxu1 }
 0x10f   : > { %v689_v24 = vadd.f32 %v688_v23, %v2331_v31 }
 0x110   : > { %v845_v26 = vmax.f32 %v520_v22, 0.0  ;;  %v374_v22 = vpack.c.bf16 %v326_v19, %v325_v18 }
 0x111   : > { %v846_v28 = vmax.f32 %v689_v24, 0.0 }
 0x112   : > { %v965_v33 = vpack.c.bf16 %v845_v26, %v843_v25 }
 0x113   : > { %v966_v34 = vpack.c.bf16 %v846_v28, %v844_v27 }
 0x114   : > { %1178 = vmatmul.bf16.gmra.mxu2 %v965_v33 }
 0x115   : > { %1347 = vmatmul.bf16.gmra.mxu3 %v966_v34  ;;  %v522_v36 = vpop.f32.mrf.mxu0 }
 0x116   : > { %v691_v37 = vpop.f32.mrf.mxu1  ;;  %v523_v38 = vadd.f32 %v522_v36, %v2329_v30 }
 0x117   : > { %v692_v39 = vadd.f32 %v691_v37, %v2331_v31  ;;  %v327_v37 = vld [vmem:[%s2297_s14 + $0x100] sm:$0xff] }
 0x118   : > { %561 = vmatmul.bf16.gmra.mxu0 %v371_v35  ;;  %v847_v44 = vmax.f32 %v523_v38, 0.0  ;;  %v328_v38 = vld [vmem:[%s2297_s14 + $0x108] sm:$0xff] }
 0x119   : > { %730 = vmatmul.bf16.gmra.mxu1 %v371_v35  ;;  %v848_v46 = vmax.f32 %v692_v39, 0.0 }
 0x11d   : > { %v524_v40 = vpop.f32.mrf.mxu0 }
 0x11e   : > { %v525_v41 = vadd.f32 %v524_v40, %v2329_v30  ;;  %v693_v42 = vpop.f32.mrf.mxu1 }
 0x11f   : > { %v694_v43 = vadd.f32 %v693_v42, %v2331_v31 }
 0x120   : > { %v849_v45 = vmax.f32 %v525_v41, 0.0  ;;  %v375_v41 = vpack.c.bf16 %v328_v38, %v327_v37 }
 0x121   : > { %v850_v47 = vmax.f32 %v694_v43, 0.0 }
 0x122   : > { %v967_v50 = vpack.c.bf16 %v849_v45, %v847_v44 }
 0x123   : > { %v968_v51 = vpack.c.bf16 %v850_v47, %v848_v46 }
 0x124   : > { %1183 = vmatmul.bf16.gmra.mxu2 %v967_v50 }
 0x125   : > { %1352 = vmatmul.bf16.gmra.mxu3 %v968_v51  ;;  %v527_v53 = vpop.f32.mrf.mxu0 }
 0x126   : > { %v696_v54 = vpop.f32.mrf.mxu1  ;;  %v528_v55 = vadd.f32 %v527_v53, %v2329_v30 }
 0x127   : > { %v697_v56 = vadd.f32 %v696_v54, %v2331_v31  ;;  %v329_v54 = vld [vmem:[%s2297_s14 + $0x110] sm:$0xff] }
 0x128   : > { %566 = vmatmul.bf16.gmra.mxu0 %v372_v52  ;;  %v851_v61 = vmax.f32 %v528_v55, 0.0  ;;  %v330_v55 = vld [vmem:[%s2297_s14 + $0x118] sm:$0xff] }
 0x129   : > { %735 = vmatmul.bf16.gmra.mxu1 %v372_v52  ;;  %v852_v63 = vmax.f32 %v697_v56, 0.0 }
 0x12d   : > { %v529_v57 = vpop.f32.mrf.mxu0 }
 0x12e   : > { %v530_v58 = vadd.f32 %v529_v57, %v2329_v30  ;;  %v698_v59 = vpop.f32.mrf.mxu1 }
 0x12f   : > { %v699_v60 = vadd.f32 %v698_v59, %v2331_v31  ;;  %v376_v59 = vpack.c.bf16 %v330_v55, %v329_v54 }
 0x130   : > { %v853_v62 = vmax.f32 %v530_v58, 0.0  ;;  %v2390_v58 = vld [vmem:[%s2686_s4] ss:$0 sm:$0xff] }
 0x131   : > { %v854_v0 = vmax.f32 %v699_v60, 0.0 }
 0x132   : > { %v969_v3 = vpack.c.bf16 %v853_v62, %v851_v61 }
 0x133   : > { %v970_v4 = vpack.c.bf16 %v854_v0, %v852_v63 }
 0x134   : > { %1188 = vmatmul.bf16.gmra.mxu2 %v969_v3 }
 0x135   : > { %1357 = vmatmul.bf16.gmra.mxu3 %v970_v4  ;;  %v532_v6 = vpop.f32.mrf.mxu0 }
 0x136   : > { %v701_v7 = vpop.f32.mrf.mxu1  ;;  %v533_v8 = vadd.f32 %v532_v6, %v2329_v30 }
 0x137   : > { %v702_v9 = vadd.f32 %v701_v7, %v2331_v31 }
 0x138   : > { %571 = vmatmul.bf16.gmra.mxu0 %v373_v5  ;;  %v855_v14 = vmax.f32 %v533_v8, 0.0 }
 0x139   : > { %740 = vmatmul.bf16.gmra.mxu1 %v373_v5  ;;  %v856_v16 = vmax.f32 %v702_v9, 0.0 }
 0x13d   : > { %v534_v10 = vpop.f32.mrf.mxu0 }
 0x13e   : > { %v535_v11 = vadd.f32 %v534_v10, %v2329_v30  ;;  %v703_v12 = vpop.f32.mrf.mxu1 }
 0x13f   : > { %v704_v13 = vadd.f32 %v703_v12, %v2331_v31 }
 0x140   : > { %v857_v15 = vmax.f32 %v535_v11, 0.0 }
 0x141   : > { %v858_v17 = vmax.f32 %v704_v13, 0.0 }
 0x142   : > { %v971_v20 = vpack.c.bf16 %v857_v15, %v855_v14  ;;  %v331_v15 = vld [vmem:[%s2297_s14 + $0x120] sm:$0xff] }
 0x143   : > { %v972_v21 = vpack.c.bf16 %v858_v17, %v856_v16  ;;  %v332_v16 = vld [vmem:[%s2297_s14 + $0x128] sm:$0xff] }
 0x144   : > { %1193 = vmatmul.bf16.gmra.mxu2 %v971_v20  ;;  %v377_v20 = vpack.c.bf16 %v332_v16, %v331_v15 }
 0x145   : > { %1362 = vmatmul.bf16.gmra.mxu3 %v972_v21  ;;  %v537_v23 = vpop.f32.mrf.mxu0 }
 0x146   : > { %v706_v24 = vpop.f32.mrf.mxu1  ;;  %v538_v25 = vadd.f32 %v537_v23, %v2329_v30 }
 0x147   : > { %v707_v26 = vadd.f32 %v706_v24, %v2331_v31 }
 0x148   : > { %576 = vmatmul.bf16.gmra.mxu0 %v374_v22  ;;  %v859_v33 = vmax.f32 %v538_v25, 0.0 }
 0x149   : > { %745 = vmatmul.bf16.gmra.mxu1 %v374_v22  ;;  %v860_v35 = vmax.f32 %v707_v26, 0.0 }
 0x14d   : > { %v539_v27 = vpop.f32.mrf.mxu0 }
 0x14e   : > { %v540_v28 = vadd.f32 %v539_v27, %v2329_v30  ;;  %v708_v29 = vpop.f32.mrf.mxu1 }
 0x14f   : > { %v709_v32 = vadd.f32 %v708_v29, %v2331_v31 }
 0x150   : > { %v861_v34 = vmax.f32 %v540_v28, 0.0 }
 0x151   : > { %v862_v36 = vmax.f32 %v709_v32, 0.0 }
 0x152   : > { %v973_v39 = vpack.c.bf16 %v861_v34, %v859_v33 }
 0x153   : > { %v974_v40 = vpack.c.bf16 %v862_v36, %v860_v35 }
 0x154   : > { %1198 = vmatmul.bf16.gmra.mxu2 %v973_v39 }
 0x155   : > { %1367 = vmatmul.bf16.gmra.mxu3 %v974_v40  ;;  %v542_v42 = vpop.f32.mrf.mxu0 }
 0x156   : > { %v711_v43 = vpop.f32.mrf.mxu1  ;;  %v543_v44 = vadd.f32 %v542_v42, %v2329_v30  ;;  %v333_v42 = vld [vmem:[%s2297_s14 + $0x130] sm:$0xff] }
 0x157   : > { %v712_v45 = vadd.f32 %v711_v43, %v2331_v31  ;;  %v334_v43 = vld [vmem:[%s2297_s14 + $0x138] sm:$0xff] }
 0x158   : > { %581 = vmatmul.bf16.gmra.mxu0 %v375_v41  ;;  %v863_v50 = vmax.f32 %v543_v44, 0.0 }
 0x159   : > { %750 = vmatmul.bf16.gmra.mxu1 %v375_v41  ;;  %v864_v52 = vmax.f32 %v712_v45, 0.0 }
 0x15d   : > { %v544_v46 = vpop.f32.mrf.mxu0 }
 0x15e   : > { %v545_v47 = vadd.f32 %v544_v46, %v2329_v30  ;;  %v713_v48 = vpop.f32.mrf.mxu1 }
 0x15f   : > { %v714_v49 = vadd.f32 %v713_v48, %v2331_v31 }
 0x160   : > { %v865_v51 = vmax.f32 %v545_v47, 0.0  ;;  %v378_v47 = vpack.c.bf16 %v334_v43, %v333_v42 }
 0x161   : > { %v866_v53 = vmax.f32 %v714_v49, 0.0 }
 0x162   : > { %v975_v56 = vpack.c.bf16 %v865_v51, %v863_v50 }
 0x163   : > { %v976_v57 = vpack.c.bf16 %v866_v53, %v864_v52 }
 0x164   : > { %1203 = vmatmul.bf16.gmra.mxu2 %v975_v56 }
 0x165   : > { %1372 = vmatmul.bf16.gmra.mxu3 %v976_v57  ;;  %v547_v60 = vpop.f32.mrf.mxu0 }
 0x166   : > { %v716_v61 = vpop.f32.mrf.mxu1  ;;  %v548_v2 = vadd.f32 %v547_v60, %v2329_v30 }
 0x167   : > { %v1164_v62 = vpop.f32.mrf.mxu2  ;;  %v717_v3 = vadd.f32 %v716_v61, %v2331_v31 }
 0x168   : > { %v1165_v63 = vadd.f32 %v2390_v58, %v1164_v62  ;;  %v1333_v0 = vpop.f32.mrf.mxu3  ;;  %586 = vmatmul.bf16.gmra.mxu0 %v376_v59  ;;  %v867_v9 = vmax.f32 %v548_v2, 0.0 }
 0x169   : > { %755 = vmatmul.bf16.gmra.mxu1 %v376_v59  ;;  %v868_v13 = vmax.f32 %v717_v3, 0.0 }
 0x16a   : > { %v1334_v1 = vadd.f32 %v1333_v0, %v1165_v63 }
 0x16c   : > { %1493 = vst [vmem:[%s2396_s12] sm:$0xff] %v1334_v1 }
 0x16d   : > { %v549_v4 = vpop.f32.mrf.mxu0 }
 0x16e   : > { %v550_v5 = vadd.f32 %v549_v4, %v2329_v30  ;;  %v718_v6 = vpop.f32.mrf.mxu1  ;;  %v335_v4 = vld [vmem:[%s2297_s14 + $0x140] sm:$0xff] }
 0x16f   : > { %v719_v7 = vadd.f32 %v718_v6, %v2331_v31  ;;  %v1166_v8 = vpop.f32.mrf.mxu2 }
 0x170   : > { %v869_v10 = vmax.f32 %v550_v5, 0.0  ;;  %v1167_v11 = vadd.f32 %v2390_v58, %v1166_v8  ;;  %v1335_v12 = vpop.f32.mrf.mxu3  ;;  %v336_v5 = vld [vmem:[%s2297_s14 + $0x148] sm:$0xff] }
 0x171   : > { %v870_v14 = vmax.f32 %v719_v7, 0.0 }
 0x172   : > { %v1336_v17 = vadd.f32 %v1335_v12, %v1167_v11  ;;  %v977_v18 = vpack.c.bf16 %v869_v10, %v867_v9  ;;  %v379_v9 = vpack.c.bf16 %v336_v5, %v335_v4 }
 0x173   : > { %v978_v19 = vpack.c.bf16 %v870_v14, %v868_v13 }
 0x174   : > { %1494 = vst [vmem:[%s2396_s12 + $0x8] sm:$0xff] %v1336_v17  ;;  %1208 = vmatmul.bf16.gmra.mxu2 %v977_v18 }
 0x175   : > { %1377 = vmatmul.bf16.gmra.mxu3 %v978_v19  ;;  %v552_v21 = vpop.f32.mrf.mxu0 }
 0x176   : > { %v721_v22 = vpop.f32.mrf.mxu1  ;;  %v553_v27 = vadd.f32 %v552_v21, %v2329_v30 }
 0x177   : > { %v1169_v23 = vpop.f32.mrf.mxu2  ;;  %v722_v28 = vadd.f32 %v721_v22, %v2331_v31 }
 0x178   : > { %v1170_v24 = vadd.f32 %v2390_v58, %v1169_v23  ;;  %v1338_v25 = vpop.f32.mrf.mxu3  ;;  %591 = vmatmul.bf16.gmra.mxu0 %v377_v20  ;;  %v871_v36 = vmax.f32 %v553_v27, 0.0 }
 0x179   : > { %760 = vmatmul.bf16.gmra.mxu1 %v377_v20  ;;  %v872_v40 = vmax.f32 %v722_v28, 0.0 }
 0x17a   : > { %v1339_v26 = vadd.f32 %v1338_v25, %v1170_v24 }
 0x17c   : > { %1495 = vst [vmem:[%s2396_s12 + $0x10] sm:$0xff] %v1339_v26 }
 0x17d   : > { %v554_v29 = vpop.f32.mrf.mxu0 }
 0x17e   : > { %v555_v32 = vadd.f32 %v554_v29, %v2329_v30  ;;  %v723_v33 = vpop.f32.mrf.mxu1  ;;  %v337_v29 = vld [vmem:[%s2297_s14 + $0x150] sm:$0xff] }
 0x17f   : > { %v724_v34 = vadd.f32 %v723_v33, %v2331_v31  ;;  %v1171_v35 = vpop.f32.mrf.mxu2 }
 0x180   : > { %v873_v37 = vmax.f32 %v555_v32, 0.0  ;;  %v1172_v38 = vadd.f32 %v2390_v58, %v1171_v35  ;;  %v1340_v39 = vpop.f32.mrf.mxu3  ;;  %v338_v32 = vld [vmem:[%s2297_s14 + $0x158] sm:$0xff] }
 0x181   : > { %v874_v41 = vmax.f32 %v724_v34, 0.0 }
 0x182   : > { %v1341_v44 = vadd.f32 %v1340_v39, %v1172_v38  ;;  %v979_v45 = vpack.c.bf16 %v873_v37, %v871_v36  ;;  %v380_v36 = vpack.c.bf16 %v338_v32, %v337_v29 }
 0x183   : > { %v980_v46 = vpack.c.bf16 %v874_v41, %v872_v40 }
 0x184   : > { %1496 = vst [vmem:[%s2396_s12 + $0x18] sm:$0xff] %v1341_v44  ;;  %1213 = vmatmul.bf16.gmra.mxu2 %v979_v45 }
 0x185   : > { %1382 = vmatmul.bf16.gmra.mxu3 %v980_v46  ;;  %v557_v48 = vpop.f32.mrf.mxu0 }
 0x186   : > { %v726_v49 = vpop.f32.mrf.mxu1  ;;  %v558_v54 = vadd.f32 %v557_v48, %v2329_v30 }
 0x187   : > { %v1174_v50 = vpop.f32.mrf.mxu2  ;;  %v727_v55 = vadd.f32 %v726_v49, %v2331_v31 }
 0x188   : > { %v1175_v51 = vadd.f32 %v2390_v58, %v1174_v50  ;;  %v1343_v52 = vpop.f32.mrf.mxu3  ;;  %596 = vmatmul.bf16.gmra.mxu0 %v378_v47  ;;  %v875_v62 = vmax.f32 %v558_v54, 0.0 }
 0x189   : > { %765 = vmatmul.bf16.gmra.mxu1 %v378_v47  ;;  %v876_v2 = vmax.f32 %v727_v55, 0.0 }
 0x18a   : > { %v1344_v53 = vadd.f32 %v1343_v52, %v1175_v51 }
 0x18c   : > { %1497 = vst [vmem:[%s2396_s12 + $0x20] sm:$0xff] %v1344_v53 }
 0x18d   : > { %v559_v56 = vpop.f32.mrf.mxu0 }
 0x18e   : > { %v560_v57 = vadd.f32 %v559_v56, %v2329_v30  ;;  %v728_v59 = vpop.f32.mrf.mxu1  ;;  %v339_v56 = vld [vmem:[%s2297_s14 + $0x160] sm:$0xff] }
 0x18f   : > { %v729_v60 = vadd.f32 %v728_v59, %v2331_v31  ;;  %v1176_v61 = vpop.f32.mrf.mxu2 }
 0x190   : > { %v877_v63 = vmax.f32 %v560_v57, 0.0  ;;  %v1177_v0 = vadd.f32 %v2390_v58, %v1176_v61  ;;  %v1345_v1 = vpop.f32.mrf.mxu3  ;;  %v340_v57 = vld [vmem:[%s2297_s14 + $0x168] sm:$0xff] }
 0x191   : > { %v878_v3 = vmax.f32 %v729_v60, 0.0 }
 0x192   : > { %v1346_v6 = vadd.f32 %v1345_v1, %v1177_v0  ;;  %v981_v7 = vpack.c.bf16 %v877_v63, %v875_v62  ;;  %v381_v62 = vpack.c.bf16 %v340_v57, %v339_v56 }
 0x193   : > { %v982_v8 = vpack.c.bf16 %v878_v3, %v876_v2 }
 0x194   : > { %1498 = vst [vmem:[%s2396_s12 + $0x28] sm:$0xff] %v1346_v6  ;;  %1218 = vmatmul.bf16.gmra.mxu2 %v981_v7 }
 0x195   : > { %1387 = vmatmul.bf16.gmra.mxu3 %v982_v8  ;;  %v562_v10 = vpop.f32.mrf.mxu0 }
 0x196   : > { %v731_v11 = vpop.f32.mrf.mxu1  ;;  %v563_v16 = vadd.f32 %v562_v10, %v2329_v30 }
 0x197   : > { %v1179_v12 = vpop.f32.mrf.mxu2  ;;  %v732_v17 = vadd.f32 %v731_v11, %v2331_v31 }
 0x198   : > { %v1180_v13 = vadd.f32 %v2390_v58, %v1179_v12  ;;  %v1348_v14 = vpop.f32.mrf.mxu3  ;;  %601 = vmatmul.bf16.gmra.mxu0 %v379_v9  ;;  %v879_v23 = vmax.f32 %v563_v16, 0.0 }
 0x199   : > { %770 = vmatmul.bf16.gmra.mxu1 %v379_v9  ;;  %v880_v27 = vmax.f32 %v732_v17, 0.0 }
 0x19a   : > { %v1349_v15 = vadd.f32 %v1348_v14, %v1180_v13 }
 0x19c   : > { %1499 = vst [vmem:[%s2396_s12 + $0x30] sm:$0xff] %v1349_v15 }
 0x19d   : > { %v564_v18 = vpop.f32.mrf.mxu0 }
 0x19e   : > { %v565_v19 = vadd.f32 %v564_v18, %v2329_v30  ;;  %v733_v20 = vpop.f32.mrf.mxu1  ;;  %v341_v18 = vld [vmem:[%s2297_s14 + $0x170] sm:$0xff] }
 0x19f   : > { %v734_v21 = vadd.f32 %v733_v20, %v2331_v31  ;;  %v1181_v22 = vpop.f32.mrf.mxu2 }
 0x1a0   : > { %v881_v24 = vmax.f32 %v565_v19, 0.0  ;;  %v1182_v25 = vadd.f32 %v2390_v58, %v1181_v22  ;;  %v1350_v26 = vpop.f32.mrf.mxu3  ;;  %v342_v19 = vld [vmem:[%s2297_s14 + $0x178] sm:$0xff] }
 0x1a1   : > { %v882_v28 = vmax.f32 %v734_v21, 0.0 }
 0x1a2   : > { %v1351_v33 = vadd.f32 %v1350_v26, %v1182_v25  ;;  %v983_v34 = vpack.c.bf16 %v881_v24, %v879_v23  ;;  %v382_v23 = vpack.c.bf16 %v342_v19, %v341_v18 }
 0x1a3   : > { %v984_v35 = vpack.c.bf16 %v882_v28, %v880_v27 }
 0x1a4   : > { %1500 = vst [vmem:[%s2396_s12 + $0x38] sm:$0xff] %v1351_v33  ;;  %1223 = vmatmul.bf16.gmra.mxu2 %v983_v34 }
 0x1a5   : > { %1392 = vmatmul.bf16.gmra.mxu3 %v984_v35  ;;  %v567_v37 = vpop.f32.mrf.mxu0 }
 0x1a6   : > { %v736_v38 = vpop.f32.mrf.mxu1  ;;  %v568_v43 = vadd.f32 %v567_v37, %v2329_v30 }
 0x1a7   : > { %v1184_v39 = vpop.f32.mrf.mxu2  ;;  %v737_v44 = vadd.f32 %v736_v38, %v2331_v31 }
 0x1a8   : > { %v1185_v40 = vadd.f32 %v2390_v58, %v1184_v39  ;;  %v1353_v41 = vpop.f32.mrf.mxu3  ;;  %606 = vmatmul.bf16.gmra.mxu0 %v380_v36  ;;  %v883_v50 = vmax.f32 %v568_v43, 0.0 }
 0x1a9   : > { %775 = vmatmul.bf16.gmra.mxu1 %v380_v36  ;;  %v884_v54 = vmax.f32 %v737_v44, 0.0 }
 0x1aa   : > { %v1354_v42 = vadd.f32 %v1353_v41, %v1185_v40 }
 0x1ac   : > { %1501 = vst [vmem:[%s2396_s12 + $0x40] sm:$0xff] %v1354_v42 }
 0x1ad   : > { %v569_v45 = vpop.f32.mrf.mxu0 }
 0x1ae   : > { %v570_v46 = vadd.f32 %v569_v45, %v2329_v30  ;;  %v738_v47 = vpop.f32.mrf.mxu1  ;;  %v343_v45 = vld [vmem:[%s2297_s14 + $0x180] sm:$0xff] }
 0x1af   : > { %v739_v48 = vadd.f32 %v738_v47, %v2331_v31  ;;  %v1186_v49 = vpop.f32.mrf.mxu2 }
 0x1b0   : > { %v885_v51 = vmax.f32 %v570_v46, 0.0  ;;  %v1187_v52 = vadd.f32 %v2390_v58, %v1186_v49  ;;  %v1355_v53 = vpop.f32.mrf.mxu3  ;;  %v344_v46 = vld [vmem:[%s2297_s14 + $0x188] sm:$0xff] }
 0x1b1   : > { %v886_v55 = vmax.f32 %v739_v48, 0.0 }
 0x1b2   : > { %v1356_v59 = vadd.f32 %v1355_v53, %v1187_v52  ;;  %v985_v60 = vpack.c.bf16 %v885_v51, %v883_v50  ;;  %v383_v50 = vpack.c.bf16 %v344_v46, %v343_v45 }
 0x1b3   : > { %v986_v61 = vpack.c.bf16 %v886_v55, %v884_v54 }
 0x1b4   : > { %1502 = vst [vmem:[%s2396_s12 + $0x48] sm:$0xff] %v1356_v59  ;;  %1228 = vmatmul.bf16.gmra.mxu2 %v985_v60 }
 0x1b5   : > { %1397 = vmatmul.bf16.gmra.mxu3 %v986_v61  ;;  %v572_v63 = vpop.f32.mrf.mxu0 }
 0x1b6   : > { %v741_v0 = vpop.f32.mrf.mxu1  ;;  %v573_v5 = vadd.f32 %v572_v63, %v2329_v30 }
 0x1b7   : > { %v1189_v1 = vpop.f32.mrf.mxu2  ;;  %v742_v6 = vadd.f32 %v741_v0, %v2331_v31 }
 0x1b8   : > { %v1190_v2 = vadd.f32 %v2390_v58, %v1189_v1  ;;  %v1358_v3 = vpop.f32.mrf.mxu3  ;;  %611 = vmatmul.bf16.gmra.mxu0 %v381_v62  ;;  %v887_v12 = vmax.f32 %v573_v5, 0.0 }
 0x1b9   : > { %780 = vmatmul.bf16.gmra.mxu1 %v381_v62  ;;  %v888_v16 = vmax.f32 %v742_v6, 0.0 }
 0x1ba   : > { %v1359_v4 = vadd.f32 %v1358_v3, %v1190_v2 }
 0x1bc   : > { %1503 = vst [vmem:[%s2396_s12 + $0x50] sm:$0xff] %v1359_v4 }
 0x1bd   : > { %v574_v7 = vpop.f32.mrf.mxu0 }
 0x1be   : > { %v575_v8 = vadd.f32 %v574_v7, %v2329_v30  ;;  %v743_v9 = vpop.f32.mrf.mxu1  ;;  %v345_v7 = vld [vmem:[%s2297_s14 + $0x190] sm:$0xff] }
 0x1bf   : > { %v744_v10 = vadd.f32 %v743_v9, %v2331_v31  ;;  %v1191_v11 = vpop.f32.mrf.mxu2 }
 0x1c0   : > { %v889_v13 = vmax.f32 %v575_v8, 0.0  ;;  %v1192_v14 = vadd.f32 %v2390_v58, %v1191_v11  ;;  %v1360_v15 = vpop.f32.mrf.mxu3  ;;  %v346_v8 = vld [vmem:[%s2297_s14 + $0x198] sm:$0xff] }
 0x1c1   : > { %v890_v17 = vmax.f32 %v744_v10, 0.0 }
 0x1c2   : > { %v1361_v20 = vadd.f32 %v1360_v15, %v1192_v14  ;;  %v987_v21 = vpack.c.bf16 %v889_v13, %v887_v12  ;;  %v384_v12 = vpack.c.bf16 %v346_v8, %v345_v7 }
 0x1c3   : > { %v988_v22 = vpack.c.bf16 %v890_v17, %v888_v16 }
 0x1c4   : > { %1504 = vst [vmem:[%s2396_s12 + $0x58] sm:$0xff] %v1361_v20  ;;  %1233 = vmatmul.bf16.gmra.mxu2 %v987_v21 }
 0x1c5   : > { %1402 = vmatmul.bf16.gmra.mxu3 %v988_v22  ;;  %v577_v24 = vpop.f32.mrf.mxu0 }
 0x1c6   : > { %v746_v25 = vpop.f32.mrf.mxu1  ;;  %v578_v32 = vadd.f32 %v577_v24, %v2329_v30 }
 0x1c7   : > { %v1194_v26 = vpop.f32.mrf.mxu2  ;;  %v747_v33 = vadd.f32 %v746_v25, %v2331_v31 }
 0x1c8   : > { %v1195_v27 = vadd.f32 %v2390_v58, %v1194_v26  ;;  %v1363_v28 = vpop.f32.mrf.mxu3  ;;  %616 = vmatmul.bf16.gmra.mxu0 %v382_v23  ;;  %v891_v39 = vmax.f32 %v578_v32, 0.0 }
 0x1c9   : > { %785 = vmatmul.bf16.gmra.mxu1 %v382_v23  ;;  %v892_v43 = vmax.f32 %v747_v33, 0.0 }
 0x1ca   : > { %v1364_v29 = vadd.f32 %v1363_v28, %v1195_v27 }
 0x1cc   : > { %1505 = vst [vmem:[%s2396_s12 + $0x60] sm:$0xff] %v1364_v29 }
 0x1cd   : > { %v579_v34 = vpop.f32.mrf.mxu0 }
 0x1ce   : > { %v580_v35 = vadd.f32 %v579_v34, %v2329_v30  ;;  %v748_v36 = vpop.f32.mrf.mxu1  ;;  %v347_v34 = vld [vmem:[%s2297_s14 + $0x1a0] sm:$0xff] }
 0x1cf   : > { %v749_v37 = vadd.f32 %v748_v36, %v2331_v31  ;;  %v1196_v38 = vpop.f32.mrf.mxu2 }
 0x1d0   : > { %v893_v40 = vmax.f32 %v580_v35, 0.0  ;;  %v1197_v41 = vadd.f32 %v2390_v58, %v1196_v38  ;;  %v1365_v42 = vpop.f32.mrf.mxu3  ;;  %v348_v35 = vld [vmem:[%s2297_s14 + $0x1a8] sm:$0xff] }
 0x1d1   : > { %v894_v44 = vmax.f32 %v749_v37, 0.0 }
 0x1d2   : > { %v1366_v47 = vadd.f32 %v1365_v42, %v1197_v41  ;;  %v989_v48 = vpack.c.bf16 %v893_v40, %v891_v39  ;;  %v385_v39 = vpack.c.bf16 %v348_v35, %v347_v34 }
 0x1d3   : > { %v990_v49 = vpack.c.bf16 %v894_v44, %v892_v43 }
 0x1d4   : > { %1506 = vst [vmem:[%s2396_s12 + $0x68] sm:$0xff] %v1366_v47  ;;  %1238 = vmatmul.bf16.gmra.mxu2 %v989_v48 }
 0x1d5   : > { %1407 = vmatmul.bf16.gmra.mxu3 %v990_v49  ;;  %v582_v51 = vpop.f32.mrf.mxu0 }
 0x1d6   : > { %v751_v52 = vpop.f32.mrf.mxu1  ;;  %v583_v57 = vadd.f32 %v582_v51, %v2329_v30 }
 0x1d7   : > { %v1199_v53 = vpop.f32.mrf.mxu2  ;;  %v752_v59 = vadd.f32 %v751_v52, %v2331_v31 }
 0x1d8   : > { %v1200_v54 = vadd.f32 %v2390_v58, %v1199_v53  ;;  %v1368_v55 = vpop.f32.mrf.mxu3  ;;  %621 = vmatmul.bf16.gmra.mxu0 %v383_v50  ;;  %v895_v1 = vmax.f32 %v583_v57, 0.0 }
 0x1d9   : > { %790 = vmatmul.bf16.gmra.mxu1 %v383_v50  ;;  %v896_v5 = vmax.f32 %v752_v59, 0.0 }
 0x1da   : > { %v1369_v56 = vadd.f32 %v1368_v55, %v1200_v54 }
 0x1dc   : > { %1507 = vst [vmem:[%s2396_s12 + $0x70] sm:$0xff] %v1369_v56 }
 0x1dd   : > { %v584_v60 = vpop.f32.mrf.mxu0 }
 0x1de   : > { %v585_v61 = vadd.f32 %v584_v60, %v2329_v30  ;;  %v753_v62 = vpop.f32.mrf.mxu1  ;;  %v349_v60 = vld [vmem:[%s2297_s14 + $0x1b0] sm:$0xff] }
 0x1df   : > { %v754_v63 = vadd.f32 %v753_v62, %v2331_v31  ;;  %v1201_v0 = vpop.f32.mrf.mxu2 }
 0x1e0   : > { %v897_v2 = vmax.f32 %v585_v61, 0.0  ;;  %v1202_v3 = vadd.f32 %v2390_v58, %v1201_v0  ;;  %v1370_v4 = vpop.f32.mrf.mxu3  ;;  %v350_v61 = vld [vmem:[%s2297_s14 + $0x1b8] sm:$0xff] }
 0x1e1   : > { %v898_v6 = vmax.f32 %v754_v63, 0.0 }
 0x1e2   : > { %v1371_v9 = vadd.f32 %v1370_v4, %v1202_v3  ;;  %v991_v10 = vpack.c.bf16 %v897_v2, %v895_v1  ;;  %v386_v1 = vpack.c.bf16 %v350_v61, %v349_v60 }
 0x1e3   : > { %v992_v11 = vpack.c.bf16 %v898_v6, %v896_v5 }
 0x1e4   : > { %1508 = vst [vmem:[%s2396_s12 + $0x78] sm:$0xff] %v1371_v9  ;;  %1243 = vmatmul.bf16.gmra.mxu2 %v991_v10 }
 0x1e5   : > { %1412 = vmatmul.bf16.gmra.mxu3 %v992_v11  ;;  %v587_v13 = vpop.f32.mrf.mxu0 }
 0x1e6   : > { %v756_v14 = vpop.f32.mrf.mxu1  ;;  %v588_v19 = vadd.f32 %v587_v13, %v2329_v30 }
 0x1e7   : > { %v1204_v15 = vpop.f32.mrf.mxu2  ;;  %v757_v20 = vadd.f32 %v756_v14, %v2331_v31 }
 0x1e8   : > { %v1205_v16 = vadd.f32 %v2390_v58, %v1204_v15  ;;  %v1373_v17 = vpop.f32.mrf.mxu3  ;;  %626 = vmatmul.bf16.gmra.mxu0 %v384_v12  ;;  %v899_v26 = vmax.f32 %v588_v19, 0.0 }
 0x1e9   : > { %795 = vmatmul.bf16.gmra.mxu1 %v384_v12  ;;  %v900_v32 = vmax.f32 %v757_v20, 0.0 }
 0x1ea   : > { %v1374_v18 = vadd.f32 %v1373_v17, %v1205_v16 }
 0x1ec   : > { %1509 = vst [vmem:[%s2396_s12 + $0x80] sm:$0xff] %v1374_v18 }
 0x1ed   : > { %v589_v21 = vpop.f32.mrf.mxu0 }
 0x1ee   : > { %v590_v22 = vadd.f32 %v589_v21, %v2329_v30  ;;  %v758_v23 = vpop.f32.mrf.mxu1  ;;  %v351_v21 = vld [vmem:[%s2297_s14 + $0x1c0] sm:$0xff] }
 0x1ef   : > { %v759_v24 = vadd.f32 %v758_v23, %v2331_v31  ;;  %v1206_v25 = vpop.f32.mrf.mxu2 }
 0x1f0   : > { %v901_v27 = vmax.f32 %v590_v22, 0.0  ;;  %v1207_v28 = vadd.f32 %v2390_v58, %v1206_v25  ;;  %v1375_v29 = vpop.f32.mrf.mxu3  ;;  %v352_v22 = vld [vmem:[%s2297_s14 + $0x1c8] sm:$0xff] }
 0x1f1   : > { %v902_v33 = vmax.f32 %v759_v24, 0.0 }
 0x1f2   : > { %v1376_v36 = vadd.f32 %v1375_v29, %v1207_v28  ;;  %v993_v37 = vpack.c.bf16 %v901_v27, %v899_v26  ;;  %v387_v26 = vpack.c.bf16 %v352_v22, %v351_v21 }
 0x1f3   : > { %v994_v38 = vpack.c.bf16 %v902_v33, %v900_v32 }
 0x1f4   : > { %1510 = vst [vmem:[%s2396_s12 + $0x88] sm:$0xff] %v1376_v36  ;;  %1248 = vmatmul.bf16.gmra.mxu2 %v993_v37 }
 0x1f5   : > { %1417 = vmatmul.bf16.gmra.mxu3 %v994_v38  ;;  %v592_v40 = vpop.f32.mrf.mxu0 }
 0x1f6   : > { %v761_v41 = vpop.f32.mrf.mxu1  ;;  %v593_v46 = vadd.f32 %v592_v40, %v2329_v30 }
 0x1f7   : > { %v1209_v42 = vpop.f32.mrf.mxu2  ;;  %v762_v47 = vadd.f32 %v761_v41, %v2331_v31 }
 0x1f8   : > { %v1210_v43 = vadd.f32 %v2390_v58, %v1209_v42  ;;  %v1378_v44 = vpop.f32.mrf.mxu3  ;;  %631 = vmatmul.bf16.gmra.mxu0 %v385_v39  ;;  %v903_v53 = vmax.f32 %v593_v46, 0.0 }
 0x1f9   : > { %800 = vmatmul.bf16.gmra.mxu1 %v385_v39  ;;  %v904_v57 = vmax.f32 %v762_v47, 0.0 }
 0x1fa   : > { %v1379_v45 = vadd.f32 %v1378_v44, %v1210_v43 }
 0x1fc   : > { %1511 = vst [vmem:[%s2396_s12 + $0x90] sm:$0xff] %v1379_v45 }
 0x1fd   : > { %v594_v48 = vpop.f32.mrf.mxu0 }
 0x1fe   : > { %v595_v49 = vadd.f32 %v594_v48, %v2329_v30  ;;  %v763_v50 = vpop.f32.mrf.mxu1  ;;  %v353_v48 = vld [vmem:[%s2297_s14 + $0x1d0] sm:$0xff] }
 0x1ff   : > { %v764_v51 = vadd.f32 %v763_v50, %v2331_v31  ;;  %v1211_v52 = vpop.f32.mrf.mxu2 }
 0x200   : > { %v905_v54 = vmax.f32 %v595_v49, 0.0  ;;  %v1212_v55 = vadd.f32 %v2390_v58, %v1211_v52  ;;  %v1380_v56 = vpop.f32.mrf.mxu3  ;;  %v354_v49 = vld [vmem:[%s2297_s14 + $0x1d8] sm:$0xff] }
 0x201   : > { %v906_v59 = vmax.f32 %v764_v51, 0.0 }
 0x202   : > { %v1381_v62 = vadd.f32 %v1380_v56, %v1212_v55  ;;  %v995_v63 = vpack.c.bf16 %v905_v54, %v903_v53  ;;  %v388_v53 = vpack.c.bf16 %v354_v49, %v353_v48 }
 0x203   : > { %v996_v0 = vpack.c.bf16 %v906_v59, %v904_v57 }
 0x204   : > { %1512 = vst [vmem:[%s2396_s12 + $0x98] sm:$0xff] %v1381_v62  ;;  %1253 = vmatmul.bf16.gmra.mxu2 %v995_v63 }
 0x205   : > { %1422 = vmatmul.bf16.gmra.mxu3 %v996_v0  ;;  %v597_v2 = vpop.f32.mrf.mxu0 }
 0x206   : > { %v766_v3 = vpop.f32.mrf.mxu1  ;;  %v598_v8 = vadd.f32 %v597_v2, %v2329_v30 }
 0x207   : > { %v1214_v4 = vpop.f32.mrf.mxu2  ;;  %v767_v9 = vadd.f32 %v766_v3, %v2331_v31 }
 0x208   : > { %v1215_v5 = vadd.f32 %v2390_v58, %v1214_v4  ;;  %v1383_v6 = vpop.f32.mrf.mxu3  ;;  %636 = vmatmul.bf16.gmra.mxu0 %v386_v1  ;;  %v907_v15 = vmax.f32 %v598_v8, 0.0 }
 0x209   : > { %805 = vmatmul.bf16.gmra.mxu1 %v386_v1  ;;  %v908_v19 = vmax.f32 %v767_v9, 0.0 }
 0x20a   : > { %v1384_v7 = vadd.f32 %v1383_v6, %v1215_v5 }
 0x20c   : > { %1513 = vst [vmem:[%s2396_s12 + $0xa0] sm:$0xff] %v1384_v7 }
 0x20d   : > { %v599_v10 = vpop.f32.mrf.mxu0 }
 0x20e   : > { %v600_v11 = vadd.f32 %v599_v10, %v2329_v30  ;;  %v768_v12 = vpop.f32.mrf.mxu1  ;;  %v355_v10 = vld [vmem:[%s2297_s14 + $0x1e0] sm:$0xff] }
 0x20f   : > { %v769_v13 = vadd.f32 %v768_v12, %v2331_v31  ;;  %v1216_v14 = vpop.f32.mrf.mxu2 }
 0x210   : > { %v909_v16 = vmax.f32 %v600_v11, 0.0  ;;  %v1217_v17 = vadd.f32 %v2390_v58, %v1216_v14  ;;  %v1385_v18 = vpop.f32.mrf.mxu3  ;;  %v356_v11 = vld [vmem:[%s2297_s14 + $0x1e8] sm:$0xff] }
 0x211   : > { %v910_v20 = vmax.f32 %v769_v13, 0.0 }
 0x212   : > { %v1386_v23 = vadd.f32 %v1385_v18, %v1217_v17  ;;  %v997_v24 = vpack.c.bf16 %v909_v16, %v907_v15  ;;  %v389_v15 = vpack.c.bf16 %v356_v11, %v355_v10 }
 0x213   : > { %v998_v25 = vpack.c.bf16 %v910_v20, %v908_v19 }
 0x214   : > { %1514 = vst [vmem:[%s2396_s12 + $0xa8] sm:$0xff] %v1386_v23  ;;  %1258 = vmatmul.bf16.gmra.mxu2 %v997_v24 }
 0x215   : > { %1427 = vmatmul.bf16.gmra.mxu3 %v998_v25  ;;  %v602_v27 = vpop.f32.mrf.mxu0 }
 0x216   : > { %v771_v28 = vpop.f32.mrf.mxu1  ;;  %v603_v35 = vadd.f32 %v602_v27, %v2329_v30 }
 0x217   : > { %v1219_v29 = vpop.f32.mrf.mxu2  ;;  %v772_v36 = vadd.f32 %v771_v28, %v2331_v31 }
 0x218   : > { %v1220_v32 = vadd.f32 %v2390_v58, %v1219_v29  ;;  %v1388_v33 = vpop.f32.mrf.mxu3  ;;  %641 = vmatmul.bf16.gmra.mxu0 %v387_v26  ;;  %v911_v42 = vmax.f32 %v603_v35, 0.0 }
 0x219   : > { %810 = vmatmul.bf16.gmra.mxu1 %v387_v26  ;;  %v912_v46 = vmax.f32 %v772_v36, 0.0 }
 0x21a   : > { %v1389_v34 = vadd.f32 %v1388_v33, %v1220_v32 }
 0x21c   : > { %1515 = vst [vmem:[%s2396_s12 + $0xb0] sm:$0xff] %v1389_v34 }
 0x21d   : > { %v604_v37 = vpop.f32.mrf.mxu0 }
 0x21e   : > { %v605_v38 = vadd.f32 %v604_v37, %v2329_v30  ;;  %v773_v39 = vpop.f32.mrf.mxu1  ;;  %v357_v37 = vld [vmem:[%s2297_s14 + $0x1f0] sm:$0xff] }
 0x21f   : > { %v774_v40 = vadd.f32 %v773_v39, %v2331_v31  ;;  %v1221_v41 = vpop.f32.mrf.mxu2 }
 0x220   : > { %v913_v43 = vmax.f32 %v605_v38, 0.0  ;;  %v1222_v44 = vadd.f32 %v2390_v58, %v1221_v41  ;;  %v1390_v45 = vpop.f32.mrf.mxu3  ;;  %v358_v38 = vld [vmem:[%s2297_s14 + $0x1f8] sm:$0xff] }
 0x221   : > { %v914_v47 = vmax.f32 %v774_v40, 0.0 }
 0x222   : > { %v999_v50 = vpack.c.bf16 %v913_v43, %v911_v42  ;;  %v1391_v51 = vadd.f32 %v1390_v45, %v1222_v44  ;;  %v390_v42 = vpack.c.bf16 %v358_v38, %v357_v37 }
 0x223   : > { %v1000_v52 = vpack.c.bf16 %v914_v47, %v912_v46 }
 0x224   : > { %1516 = vst [vmem:[%s2396_s12 + $0xb8] sm:$0xff] %v1391_v51  ;;  %1263 = vmatmul.bf16.gmra.mxu2 %v999_v50 }
 0x225   : > { %1432 = vmatmul.bf16.gmra.mxu3 %v1000_v52  ;;  %v607_v54 = vpop.f32.mrf.mxu0 }
 0x226   : > { %v776_v55 = vpop.f32.mrf.mxu1  ;;  %v608_v61 = vadd.f32 %v607_v54, %v2329_v30 }
 0x227   : > { %v1224_v56 = vpop.f32.mrf.mxu2  ;;  %v777_v62 = vadd.f32 %v776_v55, %v2331_v31 }
 0x228   : > { %v1225_v57 = vadd.f32 %v2390_v58, %v1224_v56  ;;  %v1393_v59 = vpop.f32.mrf.mxu3  ;;  %646 = vmatmul.bf16.gmra.mxu0 %v388_v53  ;;  %v915_v4 = vmax.f32 %v608_v61, 0.0 }
 0x229   : > { %815 = vmatmul.bf16.gmra.mxu1 %v388_v53  ;;  %v916_v8 = vmax.f32 %v777_v62, 0.0 }
 0x22a   : > { %v1394_v60 = vadd.f32 %v1393_v59, %v1225_v57 }
 0x22c   : > { %1517 = vst [vmem:[%s2396_s12 + $0xc0] sm:$0xff] %v1394_v60 }
 0x22d   : > { %v609_v63 = vpop.f32.mrf.mxu0 }
 0x22e   : > { %v610_v0 = vadd.f32 %v609_v63, %v2329_v30  ;;  %v778_v1 = vpop.f32.mrf.mxu1 }
 0x22f   : > { %v779_v2 = vadd.f32 %v778_v1, %v2331_v31  ;;  %v1226_v3 = vpop.f32.mrf.mxu2 }
 0x230   : > { %v917_v5 = vmax.f32 %v610_v0, 0.0  ;;  %v1227_v6 = vadd.f32 %v2390_v58, %v1226_v3  ;;  %v1395_v7 = vpop.f32.mrf.mxu3 }
 0x231   : > { %v918_v9 = vmax.f32 %v779_v2, 0.0 }
 0x232   : > { %v1001_v12 = vpack.c.bf16 %v917_v5, %v915_v4  ;;  %v1396_v13 = vadd.f32 %v1395_v7, %v1227_v6 }
 0x233   : > { %v1002_v14 = vpack.c.bf16 %v918_v9, %v916_v8 }
 0x234   : > { %1518 = vst [vmem:[%s2396_s12 + $0xc8] sm:$0xff] %v1396_v13  ;;  %1268 = vmatmul.bf16.gmra.mxu2 %v1001_v12 }
 0x235   : > { %1437 = vmatmul.bf16.gmra.mxu3 %v1002_v14  ;;  %v612_v16 = vpop.f32.mrf.mxu0 }
 0x236   : > { %v781_v17 = vpop.f32.mrf.mxu1  ;;  %v613_v22 = vadd.f32 %v612_v16, %v2329_v30 }
 0x237   : > { %v1229_v18 = vpop.f32.mrf.mxu2  ;;  %v782_v23 = vadd.f32 %v781_v17, %v2331_v31 }
 0x238   : > { %v1230_v19 = vadd.f32 %v2390_v58, %v1229_v18  ;;  %v1398_v20 = vpop.f32.mrf.mxu3  ;;  %651 = vmatmul.bf16.gmra.mxu0 %v389_v15  ;;  %v919_v29 = vmax.f32 %v613_v22, 0.0 }
 0x239   : > { %820 = vmatmul.bf16.gmra.mxu1 %v389_v15  ;;  %v920_v35 = vmax.f32 %v782_v23, 0.0 }
 0x23a   : > { %v1399_v21 = vadd.f32 %v1398_v20, %v1230_v19 }
 0x23c   : > { %1519 = vst [vmem:[%s2396_s12 + $0xd0] sm:$0xff] %v1399_v21 }
 0x23d   : > { %v614_v24 = vpop.f32.mrf.mxu0 }
 0x23e   : > { %v615_v25 = vadd.f32 %v614_v24, %v2329_v30  ;;  %v783_v26 = vpop.f32.mrf.mxu1 }
 0x23f   : > { %v784_v27 = vadd.f32 %v783_v26, %v2331_v31  ;;  %v1231_v28 = vpop.f32.mrf.mxu2 }
 0x240   : > { %v921_v32 = vmax.f32 %v615_v25, 0.0  ;;  %v1232_v33 = vadd.f32 %v2390_v58, %v1231_v28  ;;  %v1400_v34 = vpop.f32.mrf.mxu3 }
 0x241   : > { %v922_v36 = vmax.f32 %v784_v27, 0.0 }
 0x242   : > { %v1003_v39 = vpack.c.bf16 %v921_v32, %v919_v29  ;;  %v1401_v40 = vadd.f32 %v1400_v34, %v1232_v33 }
 0x243   : > { %v1004_v41 = vpack.c.bf16 %v922_v36, %v920_v35 }
 0x244   : > { %1520 = vst [vmem:[%s2396_s12 + $0xd8] sm:$0xff] %v1401_v40  ;;  %1273 = vmatmul.bf16.gmra.mxu2 %v1003_v39 }
 0x245   : > { %1442 = vmatmul.bf16.gmra.mxu3 %v1004_v41  ;;  %v617_v43 = vpop.f32.mrf.mxu0 }
 0x246   : > { %v786_v44 = vpop.f32.mrf.mxu1  ;;  %v618_v49 = vadd.f32 %v617_v43, %v2329_v30 }
 0x247   : > { %v1234_v45 = vpop.f32.mrf.mxu2  ;;  %v787_v50 = vadd.f32 %v786_v44, %v2331_v31 }
 0x248   : > { %v1235_v46 = vadd.f32 %v2390_v58, %v1234_v45  ;;  %v1403_v47 = vpop.f32.mrf.mxu3  ;;  %656 = vmatmul.bf16.gmra.mxu0 %v390_v42  ;;  %v923_v56 = vmax.f32 %v618_v49, 0.0 }
 0x249   : > { %825 = vmatmul.bf16.gmra.mxu1 %v390_v42  ;;  %v924_v61 = vmax.f32 %v787_v50, 0.0 }
 0x24a   : > { %v1404_v48 = vadd.f32 %v1403_v47, %v1235_v46 }
 0x24c   : > { %1521 = vst [vmem:[%s2396_s12 + $0xe0] sm:$0xff] %v1404_v48 }
 0x24d   : > { %v619_v51 = vpop.f32.mrf.mxu0 }
 0x24e   : > { %v620_v52 = vadd.f32 %v619_v51, %v2329_v30  ;;  %v788_v53 = vpop.f32.mrf.mxu1  ;;  %v2563_v51 = vld [vmem:[%s2686_s4] ss:$0 sm:$0xff] }
 0x24f   : > { %v789_v54 = vadd.f32 %v788_v53, %v2331_v31  ;;  %v1236_v55 = vpop.f32.mrf.mxu2 }
 0x250   : > { %v925_v57 = vmax.f32 %v620_v52, 0.0  ;;  %v1237_v59 = vadd.f32 %v2390_v58, %v1236_v55  ;;  %v1405_v60 = vpop.f32.mrf.mxu3 }
 0x251   : > { %v926_v62 = vmax.f32 %v789_v54, 0.0 }
 0x252   : > { %v1005_v63 = vpack.c.bf16 %v925_v57, %v923_v56  ;;  %v1406_v0 = vadd.f32 %v1405_v60, %v1237_v59 }
 0x253   : > { %v1006_v1 = vpack.c.bf16 %v926_v62, %v924_v61 }
 0x254   : > { %1522 = vst [vmem:[%s2396_s12 + $0xe8] sm:$0xff] %v1406_v0  ;;  %1278 = vmatmul.bf16.gmra.mxu2 %v1005_v63 }
 0x255   : > { %1447 = vmatmul.bf16.gmra.mxu3 %v1006_v1  ;;  %v622_v2 = vpop.f32.mrf.mxu0 }
 0x256   : > { %v791_v3 = vpop.f32.mrf.mxu1  ;;  %v623_v8 = vadd.f32 %v622_v2, %v2329_v30 }
 0x257   : > { %v1239_v4 = vpop.f32.mrf.mxu2  ;;  %v792_v9 = vadd.f32 %v791_v3, %v2331_v31 }
 0x258   : > { %v1240_v5 = vadd.f32 %v2390_v58, %v1239_v4  ;;  %v1408_v6 = vpop.f32.mrf.mxu3  ;;  %v927_v15 = vmax.f32 %v623_v8, 0.0 }
 0x259   : > { %v928_v19 = vmax.f32 %v792_v9, 0.0 }
 0x25a   : > { %v1409_v7 = vadd.f32 %v1408_v6, %v1240_v5 }
 0x25c   : > { %1523 = vst [vmem:[%s2396_s12 + $0xf0] sm:$0xff] %v1409_v7 }
 0x25d   : > { %v624_v10 = vpop.f32.mrf.mxu0 }
 0x25e   : > { %v625_v11 = vadd.f32 %v624_v10, %v2329_v30  ;;  %v793_v12 = vpop.f32.mrf.mxu1 }
 0x25f   : > { %v794_v13 = vadd.f32 %v793_v12, %v2331_v31  ;;  %v1241_v14 = vpop.f32.mrf.mxu2 }
 0x260   : > { %v929_v16 = vmax.f32 %v625_v11, 0.0  ;;  %v1242_v17 = vadd.f32 %v2390_v58, %v1241_v14  ;;  %v1410_v18 = vpop.f32.mrf.mxu3 }
 0x261   : > { %v930_v20 = vmax.f32 %v794_v13, 0.0 }
 0x262   : > { %v1007_v21 = vpack.c.bf16 %v929_v16, %v927_v15  ;;  %v1411_v22 = vadd.f32 %v1410_v18, %v1242_v17 }
 0x263   : > { %v1008_v23 = vpack.c.bf16 %v930_v20, %v928_v19 }
 0x264   : > { %1524 = vst [vmem:[%s2396_s12 + $0xf8] sm:$0xff] %v1411_v22  ;;  %1283 = vmatmul.bf16.gmra.mxu2 %v1007_v21 }
 0x265   : > { %1452 = vmatmul.bf16.gmra.mxu3 %v1008_v23  ;;  %v627_v24 = vpop.f32.mrf.mxu0 }
 0x266   : > { %v796_v25 = vpop.f32.mrf.mxu1  ;;  %v628_v32 = vadd.f32 %v627_v24, %v2329_v30 }
 0x267   : > { %v1244_v26 = vpop.f32.mrf.mxu2  ;;  %v797_v33 = vadd.f32 %v796_v25, %v2331_v31 }
 0x268   : > { %v1245_v27 = vadd.f32 %v2390_v58, %v1244_v26  ;;  %v1413_v28 = vpop.f32.mrf.mxu3  ;;  %v931_v39 = vmax.f32 %v628_v32, 0.0 }
 0x269   : > { %v932_v43 = vmax.f32 %v797_v33, 0.0 }
 0x26a   : > { %v1414_v29 = vadd.f32 %v1413_v28, %v1245_v27 }
 0x26c   : > { %1525 = vst [vmem:[%s2396_s12 + $0x100] sm:$0xff] %v1414_v29 }
 0x26d   : > { %v629_v34 = vpop.f32.mrf.mxu0 }
 0x26e   : > { %v630_v35 = vadd.f32 %v629_v34, %v2329_v30  ;;  %v798_v36 = vpop.f32.mrf.mxu1 }
 0x26f   : > { %v799_v37 = vadd.f32 %v798_v36, %v2331_v31  ;;  %v1246_v38 = vpop.f32.mrf.mxu2 }
 0x270   : > { %v933_v40 = vmax.f32 %v630_v35, 0.0  ;;  %v1247_v41 = vadd.f32 %v2390_v58, %v1246_v38  ;;  %v1415_v42 = vpop.f32.mrf.mxu3 }
 0x271   : > { %v934_v44 = vmax.f32 %v799_v37, 0.0 }
 0x272   : > { %v1009_v45 = vpack.c.bf16 %v933_v40, %v931_v39  ;;  %v1416_v46 = vadd.f32 %v1415_v42, %v1247_v41 }
 0x273   : > { %v1010_v47 = vpack.c.bf16 %v934_v44, %v932_v43 }
 0x274   : > { %1526 = vst [vmem:[%s2396_s12 + $0x108] sm:$0xff] %v1416_v46  ;;  %1288 = vmatmul.bf16.gmra.mxu2 %v1009_v45 }
 0x275   : > { %1457 = vmatmul.bf16.gmra.mxu3 %v1010_v47  ;;  %v632_v48 = vpop.f32.mrf.mxu0 }
 0x276   : > { %v801_v49 = vpop.f32.mrf.mxu1  ;;  %v633_v54 = vadd.f32 %v632_v48, %v2329_v30 }
 0x277   : > { %v1249_v50 = vpop.f32.mrf.mxu2  ;;  %v802_v55 = vadd.f32 %v801_v49, %v2331_v31 }
 0x278   : > { %v1250_v58 = vadd.f32 %v2563_v51, %v1249_v50  ;;  %v1418_v52 = vpop.f32.mrf.mxu3  ;;  %v935_v62 = vmax.f32 %v633_v54, 0.0 }
 0x279   : > { %v936_v2 = vmax.f32 %v802_v55, 0.0 }
 0x27a   : > { %v1419_v53 = vadd.f32 %v1418_v52, %v1250_v58 }
 0x27c   : > { %1527 = vst [vmem:[%s2396_s12 + $0x110] sm:$0xff] %v1419_v53 }
 0x27d   : > { %v634_v56 = vpop.f32.mrf.mxu0 }
 0x27e   : > { %v635_v57 = vadd.f32 %v634_v56, %v2329_v30  ;;  %v803_v59 = vpop.f32.mrf.mxu1 }
 0x27f   : > { %v804_v60 = vadd.f32 %v803_v59, %v2331_v31  ;;  %v1251_v61 = vpop.f32.mrf.mxu2 }
 0x280   : > { %v937_v63 = vmax.f32 %v635_v57, 0.0  ;;  %v1252_v0 = vadd.f32 %v2563_v51, %v1251_v61  ;;  %v1420_v1 = vpop.f32.mrf.mxu3 }
 0x281   : > { %v938_v3 = vmax.f32 %v804_v60, 0.0 }
 0x282   : > { %v1011_v4 = vpack.c.bf16 %v937_v63, %v935_v62  ;;  %v1421_v5 = vadd.f32 %v1420_v1, %v1252_v0 }
 0x283   : > { %v1012_v6 = vpack.c.bf16 %v938_v3, %v936_v2 }
 0x284   : > { %1528 = vst [vmem:[%s2396_s12 + $0x118] sm:$0xff] %v1421_v5  ;;  %1293 = vmatmul.bf16.gmra.mxu2 %v1011_v4 }
 0x285   : > { %1462 = vmatmul.bf16.gmra.mxu3 %v1012_v6  ;;  %v637_v7 = vpop.f32.mrf.mxu0 }
 0x286   : > { %v806_v8 = vpop.f32.mrf.mxu1  ;;  %v638_v13 = vadd.f32 %v637_v7, %v2329_v30 }
 0x287   : > { %v1254_v9 = vpop.f32.mrf.mxu2  ;;  %v807_v14 = vadd.f32 %v806_v8, %v2331_v31 }
 0x288   : > { %v1255_v10 = vadd.f32 %v2563_v51, %v1254_v9  ;;  %v1423_v11 = vpop.f32.mrf.mxu3  ;;  %v939_v20 = vmax.f32 %v638_v13, 0.0 }
 0x289   : > { %v940_v24 = vmax.f32 %v807_v14, 0.0 }
 0x28a   : > { %v1424_v12 = vadd.f32 %v1423_v11, %v1255_v10 }
 0x28c   : > { %1529 = vst [vmem:[%s2396_s12 + $0x120] sm:$0xff] %v1424_v12 }
 0x28d   : > { %v639_v15 = vpop.f32.mrf.mxu0 }
 0x28e   : > { %v640_v16 = vadd.f32 %v639_v15, %v2329_v30  ;;  %v808_v17 = vpop.f32.mrf.mxu1 }
 0x28f   : > { %v809_v18 = vadd.f32 %v808_v17, %v2331_v31  ;;  %v1256_v19 = vpop.f32.mrf.mxu2 }
 0x290   : > { %v941_v21 = vmax.f32 %v640_v16, 0.0  ;;  %v1257_v22 = vadd.f32 %v2563_v51, %v1256_v19  ;;  %v1425_v23 = vpop.f32.mrf.mxu3 }
 0x291   : > { %v942_v25 = vmax.f32 %v809_v18, 0.0 }
 0x292   : > { %v1013_v26 = vpack.c.bf16 %v941_v21, %v939_v20  ;;  %v1426_v27 = vadd.f32 %v1425_v23, %v1257_v22 }
 0x293   : > { %v1014_v28 = vpack.c.bf16 %v942_v25, %v940_v24 }
 0x294   : > { %1530 = vst [vmem:[%s2396_s12 + $0x128] sm:$0xff] %v1426_v27  ;;  %1298 = vmatmul.bf16.gmra.mxu2 %v1013_v26 }
 0x295   : > { %1467 = vmatmul.bf16.gmra.mxu3 %v1014_v28  ;;  %v642_v29 = vpop.f32.mrf.mxu0 }
 0x296   : > { %v811_v32 = vpop.f32.mrf.mxu1  ;;  %v643_v37 = vadd.f32 %v642_v29, %v2329_v30 }
 0x297   : > { %v1259_v33 = vpop.f32.mrf.mxu2  ;;  %v812_v38 = vadd.f32 %v811_v32, %v2331_v31 }
 0x298   : > { %v1260_v34 = vadd.f32 %v2563_v51, %v1259_v33  ;;  %v1428_v35 = vpop.f32.mrf.mxu3  ;;  %v943_v44 = vmax.f32 %v643_v37, 0.0 }
 0x299   : > { %v944_v48 = vmax.f32 %v812_v38, 0.0 }
 0x29a   : > { %v1429_v36 = vadd.f32 %v1428_v35, %v1260_v34 }
 0x29c   : > { %1531 = vst [vmem:[%s2396_s12 + $0x130] sm:$0xff] %v1429_v36 }
 0x29d   : > { %v644_v39 = vpop.f32.mrf.mxu0 }
 0x29e   : > { %v645_v40 = vadd.f32 %v644_v39, %v2329_v30  ;;  %v813_v41 = vpop.f32.mrf.mxu1 }
 0x29f   : > { %v814_v42 = vadd.f32 %v813_v41, %v2331_v31  ;;  %v1261_v43 = vpop.f32.mrf.mxu2 }
 0x2a0   : > { %v945_v45 = vmax.f32 %v645_v40, 0.0  ;;  %v1262_v46 = vadd.f32 %v2563_v51, %v1261_v43  ;;  %v1430_v47 = vpop.f32.mrf.mxu3 }
 0x2a1   : > { %v946_v49 = vmax.f32 %v814_v42, 0.0 }
 0x2a2   : > { %v1015_v50 = vpack.c.bf16 %v945_v45, %v943_v44  ;;  %v1431_v58 = vadd.f32 %v1430_v47, %v1262_v46 }
 0x2a3   : > { %v1016_v52 = vpack.c.bf16 %v946_v49, %v944_v48 }
 0x2a4   : > { %1532 = vst [vmem:[%s2396_s12 + $0x138] sm:$0xff] %v1431_v58  ;;  %1303 = vmatmul.bf16.gmra.mxu2 %v1015_v50 }
 0x2a5   : > { %1472 = vmatmul.bf16.gmra.mxu3 %v1016_v52  ;;  %v647_v53 = vpop.f32.mrf.mxu0 }
 0x2a6   : > { %v816_v54 = vpop.f32.mrf.mxu1  ;;  %v648_v60 = vadd.f32 %v647_v53, %v2329_v30 }
 0x2a7   : > { %v1264_v55 = vpop.f32.mrf.mxu2  ;;  %v817_v61 = vadd.f32 %v816_v54, %v2331_v31 }
 0x2a8   : > { %v1265_v56 = vadd.f32 %v2563_v51, %v1264_v55  ;;  %v1433_v57 = vpop.f32.mrf.mxu3  ;;  %v947_v3 = vmax.f32 %v648_v60, 0.0 }
 0x2a9   : > { %v948_v7 = vmax.f32 %v817_v61, 0.0 }
 0x2aa   : > { %v1434_v59 = vadd.f32 %v1433_v57, %v1265_v56 }
 0x2ac   : > { %1533 = vst [vmem:[%s2396_s12 + $0x140] sm:$0xff] %v1434_v59 }
 0x2ad   : > { %v649_v62 = vpop.f32.mrf.mxu0 }
 0x2ae   : > { %v650_v63 = vadd.f32 %v649_v62, %v2329_v30  ;;  %v818_v0 = vpop.f32.mrf.mxu1 }
 0x2af   : > { %v819_v1 = vadd.f32 %v818_v0, %v2331_v31  ;;  %v1266_v2 = vpop.f32.mrf.mxu2 }
 0x2b0   : > { %v949_v4 = vmax.f32 %v650_v63, 0.0  ;;  %v1267_v5 = vadd.f32 %v2563_v51, %v1266_v2  ;;  %v1435_v6 = vpop.f32.mrf.mxu3 }
 0x2b1   : > { %v950_v8 = vmax.f32 %v819_v1, 0.0 }
 0x2b2   : > { %v1017_v9 = vpack.c.bf16 %v949_v4, %v947_v3  ;;  %v1436_v10 = vadd.f32 %v1435_v6, %v1267_v5 }
 0x2b3   : > { %v1018_v11 = vpack.c.bf16 %v950_v8, %v948_v7 }
 0x2b4   : > { %1534 = vst [vmem:[%s2396_s12 + $0x148] sm:$0xff] %v1436_v10  ;;  %1308 = vmatmul.bf16.gmra.mxu2 %v1017_v9 }
 0x2b5   : > { %1477 = vmatmul.bf16.gmra.mxu3 %v1018_v11  ;;  %v652_v12 = vpop.f32.mrf.mxu0 }
 0x2b6   : > { %v821_v13 = vpop.f32.mrf.mxu1  ;;  %v653_v18 = vadd.f32 %v652_v12, %v2329_v30 }
 0x2b7   : > { %v1269_v14 = vpop.f32.mrf.mxu2  ;;  %v822_v19 = vadd.f32 %v821_v13, %v2331_v31 }
 0x2b8   : > { %v1270_v15 = vadd.f32 %v2563_v51, %v1269_v14  ;;  %v1438_v16 = vpop.f32.mrf.mxu3  ;;  %v951_v25 = vmax.f32 %v653_v18, 0.0 }
 0x2b9   : > { %v952_v29 = vmax.f32 %v822_v19, 0.0 }
 0x2ba   : > { %v1439_v17 = vadd.f32 %v1438_v16, %v1270_v15 }
 0x2bc   : > { %1535 = vst [vmem:[%s2396_s12 + $0x150] sm:$0xff] %v1439_v17 }
 0x2bd   : > { %v654_v20 = vpop.f32.mrf.mxu0 }
 0x2be   : > { %v655_v21 = vadd.f32 %v654_v20, %v2329_v30  ;;  %v823_v22 = vpop.f32.mrf.mxu1 }
 0x2bf   : > { %v824_v23 = vadd.f32 %v823_v22, %v2331_v31  ;;  %v1271_v24 = vpop.f32.mrf.mxu2 }
 0x2c0   : > { %v953_v26 = vmax.f32 %v655_v21, 0.0  ;;  %v1272_v27 = vadd.f32 %v2563_v51, %v1271_v24  ;;  %v1440_v28 = vpop.f32.mrf.mxu3 }
 0x2c1   : > { %v954_v32 = vmax.f32 %v824_v23, 0.0 }
 0x2c2   : > { %v1019_v33 = vpack.c.bf16 %v953_v26, %v951_v25  ;;  %v1441_v34 = vadd.f32 %v1440_v28, %v1272_v27 }
 0x2c3   : > { %v1020_v35 = vpack.c.bf16 %v954_v32, %v952_v29 }
 0x2c4   : > { %1536 = vst [vmem:[%s2396_s12 + $0x158] sm:$0xff] %v1441_v34  ;;  %1313 = vmatmul.bf16.gmra.mxu2 %v1019_v33 }
 0x2c5   : > { %1482 = vmatmul.bf16.gmra.mxu3 %v1020_v35  ;;  %v657_v36 = vpop.f32.mrf.mxu0 }
 0x2c6   : > { %v826_v37 = vpop.f32.mrf.mxu1  ;;  %v658_v42 = vadd.f32 %v657_v36, %v2329_v30 }
 0x2c7   : > { %v1274_v38 = vpop.f32.mrf.mxu2  ;;  %v827_v43 = vadd.f32 %v826_v37, %v2331_v31 }
 0x2c8   : > { %v1275_v39 = vadd.f32 %v2563_v51, %v1274_v38  ;;  %v1443_v40 = vpop.f32.mrf.mxu3  ;;  %v955_v49 = vmax.f32 %v658_v42, 0.0 }
 0x2c9   : > { %v956_v53 = vmax.f32 %v827_v43, 0.0 }
 0x2ca   : > { %v1444_v41 = vadd.f32 %v1443_v40, %v1275_v39 }
 0x2cc   : > { %1537 = vst [vmem:[%s2396_s12 + $0x160] sm:$0xff] %v1444_v41 }
 0x2cd   : > { %v659_v44 = vpop.f32.mrf.mxu0 }
 0x2ce   : > { %v660_v45 = vadd.f32 %v659_v44, %v2329_v30  ;;  %v828_v46 = vpop.f32.mrf.mxu1 }
 0x2cf   : > { %v829_v47 = vadd.f32 %v828_v46, %v2331_v31  ;;  %v1276_v48 = vpop.f32.mrf.mxu2 }
 0x2d0   : > { %v957_v50 = vmax.f32 %v660_v45, 0.0  ;;  %v1277_v58 = vadd.f32 %v2563_v51, %v1276_v48  ;;  %v1445_v52 = vpop.f32.mrf.mxu3 }
 0x2d1   : > { %v958_v54 = vmax.f32 %v829_v47, 0.0 }
 0x2d2   : > { %v1021_v55 = vpack.c.bf16 %v957_v50, %v955_v49  ;;  %v1446_v56 = vadd.f32 %v1445_v52, %v1277_v58 }
 0x2d3   : > { %v1022_v57 = vpack.c.bf16 %v958_v54, %v956_v53 }
 0x2d4   : > { %1538 = vst [vmem:[%s2396_s12 + $0x168] sm:$0xff] %v1446_v56  ;;  %1318 = vmatmul.bf16.gmra.mxu2 %v1021_v55 }
 0x2d5   : > { %1487 = vmatmul.bf16.gmra.mxu3 %v1022_v57 }
 0x2d7   : > { %v1279_v30 = vpop.f32.mrf.mxu2 }
 0x2d8   : > { %v1280_v31 = vadd.f32 %v2563_v51, %v1279_v30  ;;  %v1448_v59 = vpop.f32.mrf.mxu3 }
 0x2da   : > { %v1449_v60 = vadd.f32 %v1448_v59, %v1280_v31 }
 0x2dc   : > { %1539 = vst [vmem:[%s2396_s12 + $0x170] sm:$0xff] %v1449_v60 }
 0x2df   : > { %v1281_v61 = vpop.f32.mrf.mxu2 }
 0x2e0   : > { %v1282_v62 = vadd.f32 %v2563_v51, %v1281_v61  ;;  %v1450_v63 = vpop.f32.mrf.mxu3 }
 0x2e2   : > { %v1451_v0 = vadd.f32 %v1450_v63, %v1282_v62 }
 0x2e4   : > { %1540 = vst [vmem:[%s2396_s12 + $0x178] sm:$0xff] %v1451_v0 }
 0x2e7   : > { %v1284_v1 = vpop.f32.mrf.mxu2 }
 0x2e8   : > { %v1285_v2 = vadd.f32 %v2563_v51, %v1284_v1  ;;  %v1453_v3 = vpop.f32.mrf.mxu3 }
 0x2ea   : > { %v1454_v4 = vadd.f32 %v1453_v3, %v1285_v2 }
 0x2ec   : > { %1541 = vst [vmem:[%s2396_s12 + $0x180] sm:$0xff] %v1454_v4 }
 0x2ef   : > { %v1286_v5 = vpop.f32.mrf.mxu2 }
 0x2f0   : > { %v1287_v6 = vadd.f32 %v2563_v51, %v1286_v5  ;;  %v1455_v7 = vpop.f32.mrf.mxu3 }
 0x2f2   : > { %v1456_v8 = vadd.f32 %v1455_v7, %v1287_v6 }
 0x2f4   : > { %1542 = vst [vmem:[%s2396_s12 + $0x188] sm:$0xff] %v1456_v8 }
 0x2f7   : > { %v1289_v9 = vpop.f32.mrf.mxu2 }
 0x2f8   : > { %v1290_v10 = vadd.f32 %v2563_v51, %v1289_v9  ;;  %v1458_v11 = vpop.f32.mrf.mxu3 }
 0x2fa   : > { %v1459_v12 = vadd.f32 %v1458_v11, %v1290_v10 }
 0x2fc   : > { %1543 = vst [vmem:[%s2396_s12 + $0x190] sm:$0xff] %v1459_v12 }
 0x2ff   : > { %v1291_v13 = vpop.f32.mrf.mxu2 }
 0x300   : > { %v1292_v14 = vadd.f32 %v2563_v51, %v1291_v13  ;;  %v1460_v15 = vpop.f32.mrf.mxu3 }
 0x302   : > { %v1461_v16 = vadd.f32 %v1460_v15, %v1292_v14 }
 0x304   : > { %1544 = vst [vmem:[%s2396_s12 + $0x198] sm:$0xff] %v1461_v16 }
 0x307   : > { %v1294_v17 = vpop.f32.mrf.mxu2 }
 0x308   : > { %v1295_v18 = vadd.f32 %v2563_v51, %v1294_v17  ;;  %v1463_v19 = vpop.f32.mrf.mxu3 }
 0x30a   : > { %v1464_v20 = vadd.f32 %v1463_v19, %v1295_v18 }
 0x30c   : > { %1545 = vst [vmem:[%s2396_s12 + $0x1a0] sm:$0xff] %v1464_v20 }
 0x30f   : > { %v1296_v21 = vpop.f32.mrf.mxu2 }
 0x310   : > { %v1297_v22 = vadd.f32 %v2563_v51, %v1296_v21  ;;  %v1465_v23 = vpop.f32.mrf.mxu3 }
 0x312   : > { %v1466_v24 = vadd.f32 %v1465_v23, %v1297_v22 }
 0x314   : > { %1546 = vst [vmem:[%s2396_s12 + $0x1a8] sm:$0xff] %v1466_v24 }
 0x317   : > { %v1299_v25 = vpop.f32.mrf.mxu2 }
 0x318   : > { %v1300_v26 = vadd.f32 %v2563_v51, %v1299_v25  ;;  %v1468_v27 = vpop.f32.mrf.mxu3 }
 0x31a   : > { %v1469_v28 = vadd.f32 %v1468_v27, %v1300_v26 }
 0x31c   : > { %1547 = vst [vmem:[%s2396_s12 + $0x1b0] sm:$0xff] %v1469_v28 }
 0x31f   : > { %v1301_v29 = vpop.f32.mrf.mxu2 }
 0x320   : > { %v1302_v32 = vadd.f32 %v2563_v51, %v1301_v29  ;;  %v1470_v33 = vpop.f32.mrf.mxu3 }
 0x322   : > { %v1471_v34 = vadd.f32 %v1470_v33, %v1302_v32 }
 0x324   : > { %1548 = vst [vmem:[%s2396_s12 + $0x1b8] sm:$0xff] %v1471_v34 }
 0x327   : > { %v1304_v35 = vpop.f32.mrf.mxu2 }
 0x328   : > { %v1305_v36 = vadd.f32 %v2563_v51, %v1304_v35  ;;  %v1473_v37 = vpop.f32.mrf.mxu3 }
 0x32a   : > { %v1474_v38 = vadd.f32 %v1473_v37, %v1305_v36 }
 0x32c   : > { %1549 = vst [vmem:[%s2396_s12 + $0x1c0] sm:$0xff] %v1474_v38 }
 0x32f   : > { %v1306_v39 = vpop.f32.mrf.mxu2 }
 0x330   : > { %v1307_v40 = vadd.f32 %v2563_v51, %v1306_v39  ;;  %v1475_v41 = vpop.f32.mrf.mxu3 }
 0x332   : > { %v1476_v42 = vadd.f32 %v1475_v41, %v1307_v40 }
 0x334   : > { %1550 = vst [vmem:[%s2396_s12 + $0x1c8] sm:$0xff] %v1476_v42 }
 0x337   : > { %v1309_v43 = vpop.f32.mrf.mxu2 }
 0x338   : > { %v1310_v44 = vadd.f32 %v2563_v51, %v1309_v43  ;;  %v1478_v45 = vpop.f32.mrf.mxu3 }
 0x33a   : > { %v1479_v46 = vadd.f32 %v1478_v45, %v1310_v44 }
 0x33c   : > { %1551 = vst [vmem:[%s2396_s12 + $0x1d0] sm:$0xff] %v1479_v46 }
 0x33f   : > { %v1311_v47 = vpop.f32.mrf.mxu2 }
 0x340   : > { %v1312_v48 = vadd.f32 %v2563_v51, %v1311_v47  ;;  %v1480_v49 = vpop.f32.mrf.mxu3 }
 0x342   : > { %v1481_v50 = vadd.f32 %v1480_v49, %v1312_v48 }
 0x344   : > { %1552 = vst [vmem:[%s2396_s12 + $0x1d8] sm:$0xff] %v1481_v50 }
 0x347   : > { %v1314_v58 = vpop.f32.mrf.mxu2 }
 0x348   : > { %v1315_v52 = vadd.f32 %v2563_v51, %v1314_v58  ;;  %v1483_v53 = vpop.f32.mrf.mxu3 }
 0x34a   : > { %v1484_v54 = vadd.f32 %v1483_v53, %v1315_v52 }
 0x34c   : > { %1553 = vst [vmem:[%s2396_s12 + $0x1e0] sm:$0xff] %v1484_v54 }
 0x34f   : > { %v1316_v55 = vpop.f32.mrf.mxu2 }
 0x350   : > { %v1317_v56 = vadd.f32 %v2563_v51, %v1316_v55  ;;  %v1485_v57 = vpop.f32.mrf.mxu3 }
 0x352   : > { %v1486_v30 = vadd.f32 %v1485_v57, %v1317_v56 }
 0x354   : > { %1554 = vst [vmem:[%s2396_s12 + $0x1e8] sm:$0xff] %v1486_v30 }
 0x357   : > { %v1319_v31 = vpop.f32.mrf.mxu2 }
 0x358   : > { %v1320_v59 = vadd.f32 %v2563_v51, %v1319_v31  ;;  %v1488_v60 = vpop.f32.mrf.mxu3 }
 0x35a   : > { %v1489_v61 = vadd.f32 %v1488_v60, %v1320_v59 }
 0x35c   : > { %1555 = vst [vmem:[%s2396_s12 + $0x1f0] sm:$0xff] %v1489_v61 }
 0x35f   : > { %v1321_v62 = vpop.f32.mrf.mxu2 }
 0x360   : > { %v1322_v63 = vadd.f32 %v2563_v51, %v1321_v62  ;;  %v1490_v0 = vpop.f32.mrf.mxu3 }
 0x362   : > { %v1491_v1 = vadd.f32 %v1490_v0, %v1322_v63 }
 0x364   : > { %1556 = vst [vmem:[%s2396_s12 + $0x1f8] sm:$0xff] %v1491_v1 }
 0x365   : > { %2089 = shalt.err (!%p2086_p10)
}
 0x366   : > { %s2145_s26 = smov 128   ;;  %s2146_s12 = smov 8  }
 0x367   : > { %1871 = dma.vmem_to_hbm [thread:$0]  (%p2261_p0), %s1571_s16, 8192, %s1573_s17, %s1558_s13, %s2145_s26, %s2145_s26, %s2146_s12  }
 0x368 PF: > { %p1898_p11 = scmp.ge.s32.totalorder %s2136_s21, 2  ;;  %s1587_s27 = sand.u32 1, %s2124_s18  }
 0x369   : > { %s1588_s28 = scalar_lea.sflag [#allocation4], %s1587_s27 }
 0x36a   : > { %p1888_p12 = pnand %p1898_p11, %p2212_p6 }
 0x36c   : > { %p1889_p13 = pneg %p1888_p12 }
 0x36e   : > { %2119 = dma.done.wait (%p1889_p13), %s1588_s28, 8192  }
 0x36f   : > { %2121 = vsyncadd (%p1889_p13), %s1588_s28, 4294959104  ;;  %p20_p3 = scmp.ge.s32.totalorder %s2248_s30, 6   ;;  %s2696_s18 = smov %s2128_s19 }
 0x370   : > { %s2697_s19 = smov %s2132_s20  ;;  %s2698_s20 = smov %s2257_s9 }
 0x371   : > { %s2699_s21 = smov %s2248_s30  ;;  %22 = sbr.rel (!%p20_p3) target bundleno = 7 (0x7), region = 97 }
 0x376   :  { %1594 = vsyncpa [#allocation3], 1 }
 0x377   :  { %1596 = vsyncpa [#allocation3 + $0x1], 1 }
 0x378   :  { %1597 = vsyncpa [#allocation6], 1 }
 0x379   :  { %1598 = vsyncpa [#allocation9], 1 }
 0x37a   :  { %1599 = vsyncpa [#allocation4], 1 }
 0x37b   :  { %1601 = vsyncpa [#allocation4 + $0x1], 1 }

</bundles_post_ra>
